<compile_context>
chip_gen: v7x
topology: tpu7x:2x2x1
jax: 0.10.0
libtpu: 0.0.40
codegen_flags: <defaults>
</compile_context>

<pallas_src>
import functools

import jax
import jax.numpy as jnp
from jax.experimental import pallas as pl
from jax.experimental.pallas import tpu as pltpu


def _round_up(x, m):
    return (x + m - 1) // m * m


def _eca_gate_rows(w_ref, means, *, num_ins, k_size):
    """sigmoid(conv1d_k(means)) per row; rows >= num_ins forced to 1.0 (passthrough)."""
    c = means.shape[-1]
    pad = (k_size - 1) // 2
    lane = jax.lax.broadcasted_iota(jnp.int32, means.shape, 1)
    gate_pre = jnp.zeros_like(means)
    for j in range(k_size):                       # static k -> fully unrolled
        shift = pad - j
        s = shift % c
        shifted = means if s == 0 else pltpu.roll(means, s, 1)
        term = w_ref[j] * shifted
        if shift > 0:                             # zero padding, left edge
            term = jnp.where(lane >= shift, term, 0.0)
        elif shift < 0:                           # zero padding, right edge
            term = jnp.where(lane < c + shift, term, 0.0)
        gate_pre = gate_pre + term
    row = jax.lax.broadcasted_iota(jnp.int32, means.shape, 0)
    return jnp.where(row < num_ins, jax.nn.sigmoid(gate_pre), 1.0)


def _reduce_gate_kernel(w_ref, ins_row_ref, feats_ref, gate_ref, sums_ref,
                        counts_ref, *, num_ins, k_size):
    """Grid axis 0 walks N-tiles: accumulate sums/counts, finalize gate on last."""
    step = pl.program_id(0)

    @pl.when(step == 0)
    def _init():
        sums_ref[...] = jnp.zeros_like(sums_ref)
        counts_ref[...] = jnp.zeros_like(counts_ref)

    feats = feats_ref[...]                        # [tile, C]
    ins = ins_row_ref[...]                        # [1, tile] int32
    tile_n = feats.shape[0]
    n_rows = num_ins + 1                          # extra row swallows padded points

    one_hot_t = (jax.lax.broadcasted_iota(jnp.int32, (n_rows, tile_n), 0)
                 == ins)                          # [I+1, tile]

    # Per-instance partial sums: one MXU matmul, contraction depth = tile.
    sums_ref[...] += jax.lax.dot_general(
        one_hot_t.astype(feats.dtype), feats,
        dimension_numbers=(((1,), (0,)), ((), ())),
        preferred_element_type=jnp.float32)
    # Counts via a lane (XLU) reduction, kept in f32 so they stay exact.
    counts_ref[...] += jnp.sum(one_hot_t.astype(jnp.float32), axis=1,
                               keepdims=True)

    @pl.when(step == pl.num_programs(0) - 1)
    def _finalize():
        # Empty instances: clamp the divisor so the kernel stays finite.
        # (PyTorch yields NaN means there, but they never reach a real point.)
        means = sums_ref[...] / jnp.maximum(counts_ref[...], 1.0)   # [I+1, C]
        gate_ref[...] = _eca_gate_rows(w_ref, means, num_ins=num_ins,
                                       k_size=k_size)


def _apply_kernel(gate_ref, ins_col_ref, feats_ref, out_ref, *, num_ins):
    """Independent N-tiles: out = feats * gate[ins] (gate row num_ins == 1)."""
    feats = feats_ref[...]                        # [tile, C]
    ins = ins_col_ref[...]                        # [tile, 1] int32
    tile_n = feats.shape[0]
    n_rows = num_ins + 1
    one_hot = (jax.lax.broadcasted_iota(jnp.int32, (tile_n, n_rows), 1)
               == ins).astype(jnp.float32)        # [tile, I+1]
    point_gate = jax.lax.dot_general(             # gate[ins[n]] via MXU selection
        one_hot, gate_ref[...],
        dimension_numbers=(((1,), (0,)), ((), ())),
        preferred_element_type=jnp.float32)       # [tile, C]
    out_ref[...] = (feats.astype(jnp.float32) * point_gate).astype(out_ref.dtype)


def _fused_kernel(w_ref, ins_row_ref, ins_col_ref, feats_ref, out_ref, *,
                  num_ins, k_size):
    """Single pass: segment mean + conv1d + sigmoid + gating, feats VMEM-resident."""
    feats = feats_ref[...]                        # [N, C]
    n = feats.shape[0]
    n_rows = num_ins + 1

    oh_t = (jax.lax.broadcasted_iota(jnp.int32, (n_rows, n), 0)
            == ins_row_ref[...])                  # [I+1, N]
    sums = jax.lax.dot_general(
        oh_t.astype(feats.dtype), feats,
        dimension_numbers=(((1,), (0,)), ((), ())),
        preferred_element_type=jnp.float32)       # [I+1, C]
    counts = jnp.sum(oh_t.astype(jnp.float32), axis=1, keepdims=True)
    means = sums / jnp.maximum(counts, 1.0)
    gate = _eca_gate_rows(w_ref, means, num_ins=num_ins, k_size=k_size)

    oh = (jax.lax.broadcasted_iota(jnp.int32, (n, n_rows), 1)
          == ins_col_ref[...]).astype(jnp.float32)    # [N, I+1]
    point_gate = jax.lax.dot_general(
        oh, gate, dimension_numbers=(((1,), (0,)), ((), ())),
        preferred_element_type=jnp.float32)       # [N, C]
    out_ref[...] = (feats.astype(jnp.float32) * point_gate).astype(out_ref.dtype)


def sparse_ins_eca(feats, ins_indices_batch, conv_weight, *, num_ins,
                   k_size=3, use_weight_std=False, tile_n=512,
                   fused_max_bytes=2 * 1024 * 1024):
    """JAX/Pallas equivalent of SparseInsECA.forward on the feature matrix.

    feats            : [N, C] float32/bfloat16   (x.features)
    ins_indices_batch: [N]    int                (instance id per point)
    conv_weight      : [1, 1, k] float32         (ECA conv weight)
    Returns gated features [N, C]; the sparse indices pass through unchanged.
    """
    feats = jnp.asarray(feats)
    n, c = feats.shape

    w = jnp.asarray(conv_weight, jnp.float32).reshape(-1)      # [k]
    if use_weight_std:                                         # Conv1dWS path
        w = w - jnp.mean(w)
        w = w / (jnp.std(w, ddof=1) + 1e-5)

    n_rows = num_ins + 1
    n_pad8 = _round_up(max(n, 1), 8)
    # Fused path: feats + out + f32 temps stay comfortably inside VMEM.
    fuse = fused_max_bytes > 0 and n_pad8 * c * 4 <= fused_max_bytes

    if fuse or n <= tile_n:
        tile = n_pad8
    else:
        tile = _round_up(tile_n, 128)
    n_pad = _round_up(n, tile)
    num_tiles = n_pad // tile

    # Out-of-range ids (PyTorch leaves those rows untouched) and padded points
    # both map to the extra gate row num_ins, whose value is pinned to 1.0.
    ins32 = jnp.asarray(ins_indices_batch).astype(jnp.int32)
    ins32 = jnp.where((ins32 >= 0) & (ins32 < num_ins), ins32, num_ins)
    ins_p = jnp.pad(ins32, (0, n_pad - n), constant_values=num_ins)
    ins_row = ins_p.reshape(1, n_pad)
    ins_col = ins_p.reshape(n_pad, 1)
    feats_p = jnp.pad(feats, ((0, n_pad - n), (0, 0))) if n_pad != n else feats

    if fuse:
        out_p = pl.pallas_call(
            functools.partial(_fused_kernel, num_ins=num_ins, k_size=k_size),
            out_shape=jax.ShapeDtypeStruct((n_pad, c), feats.dtype),
            grid=(1,),
            in_specs=[
                pl.BlockSpec(memory_space=pltpu.MemorySpace.SMEM),   # conv taps
                pl.BlockSpec((1, n_pad), lambda i: (0, 0)),          # ids (row)
                pl.BlockSpec((n_pad, 1), lambda i: (0, 0)),          # ids (column)
                pl.BlockSpec((n_pad, c), lambda i: (0, 0)),          # features
            ],
            out_specs=pl.BlockSpec((n_pad, c), lambda i: (0, 0)),
            compiler_params=pltpu.CompilerParams(
                dimension_semantics=("arbitrary",)),
        )(w, ins_row, ins_col, feats_p)
        return out_p[:n]

    # -------- Phase 1: streamed segment mean + conv1d + sigmoid -> gate [I+1, C]
    gate = pl.pallas_call(
        functools.partial(_reduce_gate_kernel, num_ins=num_ins, k_size=k_size),
        out_shape=jax.ShapeDtypeStruct((n_rows, c), jnp.float32),
        grid=(num_tiles,),
        in_specs=[
            pl.BlockSpec(memory_space=pltpu.MemorySpace.SMEM),       # conv taps
            pl.BlockSpec((1, tile), lambda i: (0, i)),               # ids (row)
            pl.BlockSpec((tile, c), lambda i: (i, 0)),               # features
        ],
        out_specs=pl.BlockSpec((n_rows, c), lambda i: (0, 0)),       # resident gate
        scratch_shapes=[pltpu.VMEM((n_rows, c), jnp.float32),        # sums
                        pltpu.VMEM((n_rows, 1), jnp.float32)],       # counts
        compiler_params=pltpu.CompilerParams(
            dimension_semantics=("arbitrary",)),
    )(w, ins_row, feats_p)

    # -------- Phase 2: apply the per-instance gate to every point (parallel).
    out_p = pl.pallas_call(
        functools.partial(_apply_kernel, num_ins=num_ins),
        out_shape=jax.ShapeDtypeStruct((n_pad, c), feats.dtype),
        grid=(num_tiles,),
        in_specs=[
            pl.BlockSpec((n_rows, c), lambda i: (0, 0)),             # gate (resident)
            pl.BlockSpec((tile, 1), lambda i: (i, 0)),               # ids (column)
            pl.BlockSpec((tile, c), lambda i: (i, 0)),               # features
        ],
        out_specs=pl.BlockSpec((tile, c), lambda i: (i, 0)),
        compiler_params=pltpu.CompilerParams(
            dimension_semantics=("parallel",)),
    )(gate, ins_col, feats_p)

    return out_p[:n]


def _reference(feats, ins, conv_weight, num_ins, k_size, use_weight_std=False):
    """Plain-JAX reference mirroring the PyTorch semantics (segment-sum based)."""
    w = jnp.asarray(conv_weight, jnp.float32).reshape(-1)
    if use_weight_std:
        w = w - jnp.mean(w)
        w = w / (jnp.std(w, ddof=1) + 1e-5)
    n, c = feats.shape
    feats32 = feats.astype(jnp.float32)
    valid = (ins >= 0) & (ins < num_ins)
    seg = jnp.where(valid, ins, num_ins)                  # invalid -> spill bucket
    sums = jax.ops.segment_sum(feats32, seg, num_segments=num_ins + 1)[:num_ins]
    counts = jax.ops.segment_sum(jnp.ones((n,), jnp.float32), seg,
                                 num_segments=num_ins + 1)[:num_ins]
    means = sums / jnp.maximum(counts, 1.0)[:, None]
    pad = (k_size - 1) // 2
    padded = jnp.pad(means, ((0, 0), (pad, pad)))
    gate_pre = sum(w[j] * padded[:, j:j + c] for j in range(k_size))
    gate = jax.nn.sigmoid(gate_pre)
    gated = feats32 * gate[jnp.where(valid, ins, 0)]
    return jnp.where(valid[:, None], gated, feats32)      # out-of-range: passthrough


if __name__ == "__main__":
    key = jax.random.PRNGKey(0)
    N, C, I, K = 1024, 128, 8, 3        # points, channels, instances, conv taps
    k1, k2, k3 = jax.random.split(key, 3)

    feats = jax.random.normal(k1, (N, C), dtype=jnp.float32)
    ins_indices_batch = jax.random.randint(k2, (N,), 0, I, dtype=jnp.int32)
    # A few points whose instance id is outside ins_ids: PyTorch leaves those
    # rows untouched, the kernel must do the same.
    ins_indices_batch = ins_indices_batch.at[:5].set(
        jnp.array([I + 2, -3, 37, I, 11], jnp.int32))
    conv_weight = 0.5 * jax.random.normal(k3, (1, 1, K), dtype=jnp.float32)

    def check(out, ref):
        assert out.shape == ref.shape and out.dtype == ref.dtype
        # Tolerance leaves slack for the MXU f32 multi-pass rounding in the
        # one-hot segment-sum / gate-selection matmuls.
        err = float(jnp.max(jnp.abs(out - ref)))
        assert err < 2e-2, err

    ref = _reference(feats, ins_indices_batch, conv_weight, I, K)

    # 1) Fused single-pass path (feature matrix resident in VMEM).
    out_fused = sparse_ins_eca(feats, ins_indices_batch, conv_weight,
                               num_ins=I, k_size=K)
    check(jax.block_until_ready(out_fused), ref)

    # 2) Two-phase streaming path, multi-tile grid (1024 / 256 = 4 steps/phase).
    out_stream = sparse_ins_eca(feats, ins_indices_batch, conv_weight,
                                num_ins=I, k_size=K, tile_n=256,
                                fused_max_bytes=0)
    check(jax.block_until_ready(out_stream), ref)

    # 3) Weight-standardised conv (Conv1dWS) path.
    ref_ws = _reference(feats, ins_indices_batch, conv_weight, I, K,
                        use_weight_std=True)
    out_ws = sparse_ins_eca(feats, ins_indices_batch, conv_weight,
                            num_ins=I, k_size=K, use_weight_std=True,
                            tile_n=256, fused_max_bytes=0)
    check(jax.block_until_ready(out_ws), ref_ws)

    print("KERNEL_OK")
</pallas_src>

<mosaic_0001>
module attributes {stable_mosaic.version = 11 : i64} {
  func.func @_fused_kernel(%arg0: i32, %arg1: memref<3xf32, #tpu.memory_space<smem>>, %arg2: memref<1x1024xi32, #tpu.memory_space<vmem>>, %arg3: memref<1024x1xi32, #tpu.memory_space<vmem>>, %arg4: memref<1024x128xf32, #tpu.memory_space<vmem>>, %arg5: memref<1024x128xf32, #tpu.memory_space<vmem>>) attributes {dimension_semantics = [#tpu.dimension_semantics<arbitrary>], iteration_bounds = array<i64: 1>, scalar_prefetch = 0 : i64, scratch_operands = 0 : i64, tpu.core_type = #tpu.core_type<tc>, window_params = [{transform_indices = @transform_0, window_bounds = array<i64: 3>}, {pipeline_mode = #tpu.pipeline_mode<synchronous>, transform_indices = @transform_1, window_bounds = array<i64: 1, 1024>}, {pipeline_mode = #tpu.pipeline_mode<synchronous>, transform_indices = @transform_2, window_bounds = array<i64: 1024, 1>}, {pipeline_mode = #tpu.pipeline_mode<synchronous>, transform_indices = @transform_3, window_bounds = array<i64: 1024, 128>}, {pipeline_mode = #tpu.pipeline_mode<synchronous>, transform_indices = @transform_4, window_bounds = array<i64: 1024, 128>}]} {
    %c0 = arith.constant 0 : index
    %c0_0 = arith.constant 0 : index
    %0 = vector.load %arg4[%c0, %c0_0] : memref<1024x128xf32, #tpu.memory_space<vmem>>, vector<1024x128xf32>
    %1 = tpu.iota {dimensions = array<i32: 0>} : vector<9x1024xi32>
    %c0_1 = arith.constant 0 : index
    %c0_2 = arith.constant 0 : index
    %2 = vector.load %arg2[%c0_1, %c0_2] : memref<1x1024xi32, #tpu.memory_space<vmem>>, vector<1x1024xi32>
    %3 = vector.broadcast %2 : vector<1x1024xi32> to vector<9x1024xi32>
    %4 = arith.cmpi eq, %1, %3 : vector<9x1024xi32>
    %5 = arith.extui %4 : vector<9x1024xi1> to vector<9x1024xi32>
    %6 = arith.sitofp %5 : vector<9x1024xi32> to vector<9x1024xf32>
    %cst = arith.constant dense<0.000000e+00> : vector<9x128xf32>
    %7 = tpu.matmul %6, %0, %cst {dimension_numbers = #tpu.dot_dimension_numbers<[1], [0], [0], [1], [0, 0, 1, 1], [], []>} : vector<9x1024xf32>, vector<1024x128xf32>, vector<9x128xf32> -> vector<9x128xf32>
    %8 = arith.extui %4 : vector<9x1024xi1> to vector<9x1024xi32>
    %9 = arith.sitofp %8 : vector<9x1024xi32> to vector<9x1024xf32>
    %cst_3 = arith.constant dense<0.000000e+00> : vector<9xf32>
    %10 = vector.multi_reduction <add>, %9, %cst_3 [1] : vector<9x1024xf32> to vector<9xf32>
    %11 = vector.shape_cast %10 : vector<9xf32> to vector<9x1xf32>
    %cst_4 = arith.constant 1.000000e+00 : f32
    %12 = vector.broadcast %cst_4 : f32 to vector<9x1xf32>
    %13 = arith.maximumf %11, %12 : vector<9x1xf32>
    %14 = vector.broadcast %13 : vector<9x1xf32> to vector<9x128xf32>
    %15 = arith.divf %7, %14 : vector<9x128xf32>
    %16 = tpu.iota {dimensions = array<i32: 1>} : vector<9x128xi32>
    %cst_5 = arith.constant 0.000000e+00 : f32
    %17 = vector.broadcast %cst_5 : f32 to vector<9x128xf32>
    %c1_i32 = arith.constant 1 : i32
    %18 = tpu.dynamic_rotate %15 by %c1_i32 dim 1 : vector<9x128xf32>, i32 -> vector<9x128xf32>
    %c0_6 = arith.constant 0 : index
    %19 = memref.load %arg1[%c0_6] : memref<3xf32, #tpu.memory_space<smem>>
    %20 = vector.broadcast %19 : f32 to vector<9x128xf32>
    %21 = arith.mulf %20, %18 : vector<9x128xf32>
    %c1_i32_7 = arith.constant 1 : i32
    %22 = vector.broadcast %c1_i32_7 : i32 to vector<9x128xi32>
    %23 = arith.cmpi sge, %16, %22 : vector<9x128xi32>
    %cst_8 = arith.constant 0.000000e+00 : f32
    %24 = vector.broadcast %cst_8 : f32 to vector<9x128xf32>
    %25 = arith.select %23, %21, %24 : vector<9x128xi1>, vector<9x128xf32>
    %26 = arith.addf %17, %25 : vector<9x128xf32>
    %c1 = arith.constant 1 : index
    %27 = memref.load %arg1[%c1] : memref<3xf32, #tpu.memory_space<smem>>
    %28 = vector.broadcast %27 : f32 to vector<9x128xf32>
    %29 = arith.mulf %28, %15 : vector<9x128xf32>
    %30 = arith.addf %26, %29 : vector<9x128xf32>
    %c127_i32 = arith.constant 127 : i32
    %31 = tpu.dynamic_rotate %15 by %c127_i32 dim 1 : vector<9x128xf32>, i32 -> vector<9x128xf32>
    %c2 = arith.constant 2 : index
    %32 = memref.load %arg1[%c2] : memref<3xf32, #tpu.memory_space<smem>>
    %33 = vector.broadcast %32 : f32 to vector<9x128xf32>
    %34 = arith.mulf %33, %31 : vector<9x128xf32>
    %c127_i32_9 = arith.constant 127 : i32
    %35 = vector.broadcast %c127_i32_9 : i32 to vector<9x128xi32>
    %36 = arith.cmpi slt, %16, %35 : vector<9x128xi32>
    %cst_10 = arith.constant 0.000000e+00 : f32
    %37 = vector.broadcast %cst_10 : f32 to vector<9x128xf32>
    %38 = arith.select %36, %34, %37 : vector<9x128xi1>, vector<9x128xf32>
    %39 = arith.addf %30, %38 : vector<9x128xf32>
    %40 = tpu.iota {dimensions = array<i32: 0>} : vector<9x128xi32>
    %c8_i32 = arith.constant 8 : i32
    %41 = vector.broadcast %c8_i32 : i32 to vector<9x128xi32>
    %42 = arith.cmpi slt, %40, %41 : vector<9x128xi32>
    %43 = arith.negf %39 : vector<9x128xf32>
    %44 = math.exp %43 : vector<9x128xf32>
    %cst_11 = arith.constant 1.000000e+00 : f32
    %45 = vector.broadcast %cst_11 : f32 to vector<9x128xf32>
    %46 = arith.addf %45, %44 : vector<9x128xf32>
    %47 = arith.divf %45, %46 : vector<9x128xf32>
    %cst_12 = arith.constant 1.000000e+00 : f32
    %48 = vector.broadcast %cst_12 : f32 to vector<9x128xf32>
    %49 = arith.select %42, %47, %48 : vector<9x128xi1>, vector<9x128xf32>
    %50 = tpu.iota {dimensions = array<i32: 1>} : vector<1024x9xi32>
    %c0_13 = arith.constant 0 : index
    %c0_14 = arith.constant 0 : index
    %51 = vector.load %arg3[%c0_13, %c0_14] : memref<1024x1xi32, #tpu.memory_space<vmem>>, vector<1024x1xi32>
    %52 = vector.broadcast %51 : vector<1024x1xi32> to vector<1024x9xi32>
    %53 = arith.cmpi eq, %50, %52 : vector<1024x9xi32>
    %54 = arith.extui %53 : vector<1024x9xi1> to vector<1024x9xi32>
    %55 = arith.sitofp %54 : vector<1024x9xi32> to vector<1024x9xf32>
    %cst_15 = arith.constant dense<0.000000e+00> : vector<1024x128xf32>
    %56 = tpu.matmul %55, %49, %cst_15 {dimension_numbers = #tpu.dot_dimension_numbers<[1], [0], [0], [1], [0, 0, 1, 1], [], []>} : vector<1024x9xf32>, vector<9x128xf32>, vector<1024x128xf32> -> vector<1024x128xf32>
    %57 = arith.mulf %0, %56 : vector<1024x128xf32>
    %c0_16 = arith.constant 0 : index
    %c0_17 = arith.constant 0 : index
    %58 = vector.load %arg5[%c0_16, %c0_17] : memref<1024x128xf32, #tpu.memory_space<vmem>>, vector<1024x128xf32>
    tpu.vector_store %arg5[%c0_16, %c0_17], %57 {strides = array<i32>} : memref<1024x128xf32, #tpu.memory_space<vmem>>, vector<1024x128xf32>,
    return
  }
  func.func @transform_0(%arg0: i32) -> i32 {
    %c0_i32 = arith.constant 0 : i32
    %c0_i32_0 = arith.constant 0 : i32
    return %c0_i32 : i32
  }
  func.func @transform_1(%arg0: i32) -> (i32, i32) {
    %c0_i32 = arith.constant 0 : i32
    %c0_i32_0 = arith.constant 0 : i32
    %c0_i32_1 = arith.constant 0 : i32
    return %c0_i32, %c0_i32_0 : i32, i32
  }
  func.func @transform_2(%arg0: i32) -> (i32, i32) {
    %c0_i32 = arith.constant 0 : i32
    %c0_i32_0 = arith.constant 0 : i32
    %c0_i32_1 = arith.constant 0 : i32
    return %c0_i32, %c0_i32_0 : i32, i32
  }
  func.func @transform_3(%arg0: i32) -> (i32, i32) {
    %c0_i32 = arith.constant 0 : i32
    %c0_i32_0 = arith.constant 0 : i32
    %c0_i32_1 = arith.constant 0 : i32
    return %c0_i32, %c0_i32_0 : i32, i32
  }
  func.func @transform_4(%arg0: i32) -> (i32, i32) {
    %c0_i32 = arith.constant 0 : i32
    %c0_i32_0 = arith.constant 0 : i32
    %c0_i32_1 = arith.constant 0 : i32
    return %c0_i32, %c0_i32_0 : i32, i32
  }
}

</mosaic_0001>

<bundles_post_ra>
// kernel: tpu_custom_call.1
= control target key start
LH: loop header
LB: loop body
LE: loop exit
PB: predicated region body
PF: predicated region fallthrough
CT: control target
= control target key end

     0   :  { %9 = vsyncpa [#allocation4], 0  ;;  %s6017_s0 = inlined_call_operand.vmem [shape: f32[3], index: 0, kind: input, shape index: {}]   ;;  %s6018_s1 = inlined_call_operand.vmem [shape: s32[1,1024], index: 1, kind: input, shape index: {}]   ;;  %s6019_s2 = inlined_call_operand.vmem [shape: s32[1024,1], index: 2, kind: input, shape index: {}]   ;;  %s6020_s3 = inlined_call_operand.vmem [shape: f32[1024,128], index: 3, kind: input, shape index: {}]   ;;  %s6021_s4 = inlined_call_operand.hbm [shape: f32[1024,128], index: 4, kind: output, shape index: {}]  }
   0x1   :  { %10 = vsyncpa [#allocation3], 0  ;;  %s17_s17 = sshll.u32 %s6017_s0, 4  ;;  %s18_s17 = int_to_ptr.vmem [resolvable:$true] %s17_s17 }
   0x2   :  { %s3941_s18 = scalar_lea.vmem %s18_s17, 16  ;;  %p3946_p1 = scmp.lt.s32.totalorder %s18_s17, %s18_s17 }
   0x3   :  { %p3942_p0 = scmp.ne.s32.totalorder %s18_s17, %s3941_s18  ;;  %p3947_p2 = scmp.lt.s32.totalorder %s3941_s18, %s3941_s18 }
   0x5   :  { %p3948_p3 = por %p3947_p2, %p3946_p1 }
   0x7   :  { %p3949_p4 = pnand %p3948_p3, %p3942_p0 }
   0x9   :  { %3952 = shalt.err (!%p3949_p4)
}
   0xa   :  { %s3979_s19 = smov [#allocation2]  }
   0xb   :  { %20 = dma.vmem_to_smem %s18_s17, 16, %s3979_s19, [#allocation4]  }
   0xc   :  { %3975 = dma.done.wait [#allocation4], 16  }
   0xd   :  { %3976 = vsyncadd [#allocation4], 4294967280 }
   0xe   :  { %30 = sfence }
   0xf   :  { %v632_v0 = vld [vmem:[%s6019_s2 + $0x30] sm:$0xff]  ;;  %v47_v1 = vld [vmem:[%s6020_s3 + $0x80] sm:$0xff]  ;;  %v48_v2 = vld [vmem:[%s6020_s3 + $0x88] sm:$0xff]  ;;  %v3980_v3 = vmov 0   ;;  %v159_v51 = vlaneseq  ;;  %s3983_s20 = smov 127   ;;  %s3984_s21 = smov 1  }
  0x10   :  { %3806 = vset.pattern.permute.xlu0 %v3980_v3  ;;  %v3659_v4 = vpack.c.bf16 %v48_v2, %v47_v1  ;;  %v79_v5 = vld [vmem:[%s6020_s3 + $0x180] sm:$0xff]  ;;  %v80_v6 = vld [vmem:[%s6020_s3 + $0x188] sm:$0xff]  ;;  %3805 = vset.pattern.permute.xlu1 %v3980_v3  ;;  %v49_v15 = vld [vmem:[%s6020_s3 + $0x90] sm:$0xff]  ;;  %s2921_s15 = sld [smem:[#allocation2 + $0x2]]  ;;  %s582_s16 = sld [smem:[#allocation2]] }
  0x11   :  { %v31_v7 = vld [vmem:[%s6020_s3] sm:$0xff]  ;;  %773 = vperm.xlu0 %3806, %v632_v0   ;;  %v3691_v8 = vpack.c.bf16 %v80_v6, %v79_v5  ;;  %v32_v9 = vld [vmem:[%s6020_s3 + $0x8] sm:$0xff]  ;;  %v50_v16 = vld [vmem:[%s6020_s3 + $0x98] sm:$0xff]  ;;  %s3986_s29 = smov [#allocation5]  }
  0x12   :  { %v63_v10 = vld [vmem:[%s6020_s3 + $0x100] sm:$0xff]  ;;  %v64_v11 = vld [vmem:[%s6020_s3 + $0x108] sm:$0xff]  ;;  %3660 = vmatprep.subr.bf16.mxu0 %v3659_v4  ;;  %v3661_v12 = vpack.c.bf16 %v32_v9, %v31_v7  ;;  %v3663_v17 = vpack.c.bf16 %v50_v16, %v49_v15  ;;  %v81_v18 = vld [vmem:[%s6020_s3 + $0x190] sm:$0xff]  ;;  %v4162_v4 = vshrl.u32 %v159_v51, 7  ;;  %s2876_s30 = sshll.u32 %s3986_s29, 4  ;;  %s2877_s30 = int_to_ptr.vmem [resolvable:$true] %s2876_s30 }
  0x13   :  { %v3693_v13 = vpack.c.bf16 %v64_v11, %v63_v10  ;;  %v635_v14 = vld [vmem:[%s6019_s2 + $0x48] sm:$0xff]  ;;  %3692 = vmatprep.subr.bf16.mxu1 %v3691_v8  ;;  %v82_v19 = vld [vmem:[%s6020_s3 + $0x198] sm:$0xff]  ;;  %v33_v20 = vld [vmem:[%s6020_s3 + $0x10] sm:$0xff]  ;;  %s3953_s9 = scalar_lea.vmem %s2877_s30, 16384  ;;  %p3958_p6 = scmp.lt.s32.totalorder %s2877_s30, %s2877_s30 }
  0x14   :  { %3662 = vmatpush3.bf16.msra.mxu0 %v3661_v12  ;;  %v3695_v21 = vpack.c.bf16 %v82_v19, %v81_v18  ;;  %v34_v22 = vld [vmem:[%s6020_s3 + $0x18] sm:$0xff]  ;;  %v65_v23 = vld [vmem:[%s6020_s3 + $0x110] sm:$0xff]  ;;  %v51_v28 = vld [vmem:[%s6020_s3 + $0xa0] sm:$0xff]  ;;  %v165_v19 = vsub.s32 0, %v4162_v4  ;;  %p3954_p5 = scmp.ne.s32.totalorder %s2877_s30, %s3953_s9  ;;  %p3959_p7 = scmp.lt.s32.totalorder %s3953_s9, %s3953_s9 }
  0x15   :  { %3694 = vmatpush3.bf16.msra.mxu1 %v3693_v13  ;;  %v66_v24 = vld [vmem:[%s6020_s3 + $0x118] sm:$0xff]  ;;  %782 = vperm.xlu0 %3806, %v635_v14   ;;  %v3665_v25 = vpack.c.bf16 %v34_v22, %v33_v20  ;;  %v52_v29 = vld [vmem:[%s6020_s3 + $0xa8] sm:$0xff]  ;;  %v83_v31 = vld [vmem:[%s6020_s3 + $0x1a0] sm:$0xff] }
  0x16   :  { %3664 = vmatprep.subr.bf16.mxu0 %v3663_v17  ;;  %v3697_v26 = vpack.c.bf16 %v66_v24, %v65_v23  ;;  %v637_v27 = vld [vmem:[%s6019_s2 + $0x58] sm:$0xff]  ;;  %3696 = vmatprep.subr.bf16.mxu1 %v3695_v21  ;;  %v3667_v30 = vpack.c.bf16 %v52_v29, %v51_v28  ;;  %v84_v32 = vld [vmem:[%s6020_s3 + $0x1a8] sm:$0xff]  ;;  %v35_v33 = vld [vmem:[%s6020_s3 + $0x20] sm:$0xff]  ;;  %v169_v23 = vsub.s32 1, %v4162_v4  ;;  %v173_v24 = vsub.s32 2, %v4162_v4  ;;  %p3960_p8 = por %p3959_p7, %p3958_p6 }
  0x17   :  { %v3699_v34 = vpack.c.bf16 %v84_v32, %v83_v31  ;;  %v36_v35 = vld [vmem:[%s6020_s3 + $0x28] sm:$0xff]  ;;  %v67_v36 = vld [vmem:[%s6020_s3 + $0x120] sm:$0xff]  ;;  %v53_v41 = vld [vmem:[%s6020_s3 + $0xb0] sm:$0xff]  ;;  %v181_v29 = vsub.s32 4, %v4162_v4 }
  0x18   :  { %v68_v37 = vld [vmem:[%s6020_s3 + $0x128] sm:$0xff]  ;;  %3666 = vmatpush3.bf16.msra.mxu0 %v3665_v25  ;;  %v3669_v38 = vpack.c.bf16 %v36_v35, %v35_v33  ;;  %v54_v42 = vld [vmem:[%s6020_s3 + $0xb8] sm:$0xff]  ;;  %v85_v44 = vld [vmem:[%s6020_s3 + $0x1b0] sm:$0xff]  ;;  %v177_v25 = vsub.s32 3, %v4162_v4  ;;  %p3961_p9 = pnand %p3960_p8, %p3954_p5 }
  0x19   :  { %3698 = vmatpush3.bf16.msra.mxu1 %v3697_v26  ;;  %v3701_v39 = vpack.c.bf16 %v68_v37, %v67_v36  ;;  %v639_v40 = vld [vmem:[%s6019_s2 + $0x68] sm:$0xff]  ;;  %788 = vperm.xlu0 %3806, %v637_v27   ;;  %v3671_v43 = vpack.c.bf16 %v54_v42, %v53_v41  ;;  %v86_v45 = vld [vmem:[%s6020_s3 + $0x1b8] sm:$0xff]  ;;  %v37_v46 = vld [vmem:[%s6020_s3 + $0x30] sm:$0xff] }
  0x1a   :  { %3668 = vmatprep.subr.bf16.mxu0 %v3667_v30  ;;  %3700 = vmatprep.subr.bf16.mxu1 %v3699_v34  ;;  %v3703_v47 = vpack.c.bf16 %v86_v45, %v85_v44  ;;  %v38_v48 = vld [vmem:[%s6020_s3 + $0x38] sm:$0xff]  ;;  %v69_v49 = vld [vmem:[%s6020_s3 + $0x130] sm:$0xff]  ;;  %v55_v52 = vld [vmem:[%s6020_s3 + $0xc0] sm:$0xff] }
  0x1b   :  { %v70_v50 = vld [vmem:[%s6020_s3 + $0x138] sm:$0xff]  ;;  %v56_v53 = vld [vmem:[%s6020_s3 + $0xc8] sm:$0xff]  ;;  %v3673_v54 = vpack.c.bf16 %v38_v48, %v37_v46  ;;  %v87_v57 = vld [vmem:[%s6020_s3 + $0x1c0] sm:$0xff] }
  0x1c   :  { %3670 = vmatpush3.bf16.msra.mxu0 %v3669_v38  ;;  %v3705_v55 = vpack.c.bf16 %v70_v50, %v69_v49  ;;  %v641_v56 = vld [vmem:[%s6019_s2 + $0x78] sm:$0xff]  ;;  %v88_v58 = vld [vmem:[%s6020_s3 + $0x1c8] sm:$0xff]  ;;  %v39_v59 = vld [vmem:[%s6020_s3 + $0x40] sm:$0xff]  ;;  %v3675_v60 = vpack.c.bf16 %v56_v53, %v55_v52  ;;  %v6022_v50 = vmov 0.0  }
  0x1d   :  { %3702 = vmatpush3.bf16.msra.mxu1 %v3701_v39  ;;  %794 = vperm.xlu0 %3806, %v639_v40   ;;  %v40_v61 = vld [vmem:[%s6020_s3 + $0x48] sm:$0xff]  ;;  %v71_v62 = vld [vmem:[%s6020_s3 + $0x140] sm:$0xff]  ;;  %v3707_v0 = vpack.c.bf16 %v88_v58, %v87_v57  ;;  %v57_v1 = vld [vmem:[%s6020_s3 + $0xd0] sm:$0xff] }
  0x1e   :  { %3672 = vmatprep.subr.bf16.mxu0 %v3671_v43  ;;  %v72_v63 = vld [vmem:[%s6020_s3 + $0x148] sm:$0xff]  ;;  %3704 = vmatprep.subr.bf16.mxu1 %v3703_v47  ;;  %v58_v2 = vld [vmem:[%s6020_s3 + $0xd8] sm:$0xff]  ;;  %v89_v3 = vld [vmem:[%s6020_s3 + $0x1d0] sm:$0xff]  ;;  %v3677_v6 = vpack.c.bf16 %v40_v61, %v39_v59 }
  0x1f   :  { %v90_v5 = vld [vmem:[%s6020_s3 + $0x1d8] sm:$0xff]  ;;  %v3709_v7 = vpack.c.bf16 %v72_v63, %v71_v62  ;;  %v41_v8 = vld [vmem:[%s6020_s3 + $0x50] sm:$0xff]  ;;  %v3679_v11 = vpack.c.bf16 %v58_v2, %v57_v1  ;;  %v59_v14 = vld [vmem:[%s6020_s3 + $0xe0] sm:$0xff] }
  0x20   :  { %3674 = vmatpush3.bf16.msra.mxu0 %v3673_v54  ;;  %v42_v9 = vld [vmem:[%s6020_s3 + $0x58] sm:$0xff]  ;;  %v73_v10 = vld [vmem:[%s6020_s3 + $0x150] sm:$0xff]  ;;  %v3711_v12 = vpack.c.bf16 %v90_v5, %v89_v3  ;;  %v60_v15 = vld [vmem:[%s6020_s3 + $0xe8] sm:$0xff]  ;;  %v6024_v54 = vmov 1.0   ;;  %v189_v3 = vsub.s32 6, %v4162_v4 }
  0x21   :  { %3706 = vmatpush3.bf16.msra.mxu1 %v3705_v55  ;;  %800 = vperm.xlu0 %3806, %v641_v56   ;;  %v74_v13 = vld [vmem:[%s6020_s3 + $0x158] sm:$0xff]  ;;  %v91_v16 = vld [vmem:[%s6020_s3 + $0x1e0] sm:$0xff]  ;;  %v92_v17 = vld [vmem:[%s6020_s3 + $0x1e8] sm:$0xff]  ;;  %v3681_v26 = vpack.c.bf16 %v42_v9, %v41_v8  ;;  %v3683_v30 = vpack.c.bf16 %v60_v15, %v59_v14  ;;  %v193_v14 = vsub.s32 7, %v4162_v4 }
  0x22   :  { %3676 = vmatprep.subr.bf16.mxu0 %v3675_v60  ;;  %3708 = vmatprep.subr.bf16.mxu1 %v3707_v0  ;;  %v43_v18 = vld [vmem:[%s6020_s3 + $0x60] sm:$0xff]  ;;  %v44_v20 = vld [vmem:[%s6020_s3 + $0x68] sm:$0xff]  ;;  %v3713_v27 = vpack.c.bf16 %v74_v13, %v73_v10  ;;  %v61_v28 = vld [vmem:[%s6020_s3 + $0xf0] sm:$0xff]  ;;  %v3715_v31 = vpack.c.bf16 %v92_v17, %v91_v16  ;;  %v185_v60 = vsub.s32 5, %v4162_v4 }
  0x23   :  { %v75_v21 = vld [vmem:[%s6020_s3 + $0x160] sm:$0xff]  ;;  %v76_v22 = vld [vmem:[%s6020_s3 + $0x168] sm:$0xff]  ;;  %v62_v32 = vld [vmem:[%s6020_s3 + $0xf8] sm:$0xff]  ;;  %v3685_v35 = vpack.c.bf16 %v44_v20, %v43_v18 }
  0x24   :  { %3678 = vmatpush3.bf16.msra.mxu0 %v3677_v6  ;;  %v93_v33 = vld [vmem:[%s6020_s3 + $0x1f0] sm:$0xff]  ;;  %v94_v34 = vld [vmem:[%s6020_s3 + $0x1f8] sm:$0xff]  ;;  %v3717_v36 = vpack.c.bf16 %v76_v22, %v75_v21  ;;  %v4223_v37 = vld [vmem:[%s6018_s1] sm:$0xff]  ;;  %v3687_v42 = vpack.c.bf16 %v62_v32, %v61_v28 }
  0x25   :  { %3710 = vmatpush3.bf16.msra.mxu1 %v3709_v7  ;;  %3680 = vmatprep.subr.bf16.mxu0 %v3679_v11  ;;  %v4226_v38 = vrot.slane %v4223_v37, %v165_v19  ;;  %v4229_v39 = vrot.slane %v4223_v37, %v169_v23  ;;  %v4232_v40 = vrot.slane %v4223_v37, %v173_v24  ;;  %v45_v44 = vld [vmem:[%s6020_s3 + $0x70] sm:$0xff]  ;;  %v46_v45 = vld [vmem:[%s6020_s3 + $0x78] sm:$0xff]  ;;  %v111_v49 = vld [vmem:[%s6020_s3 + $0x280] sm:$0xff] }
  0x26   :  { %3712 = vmatprep.subr.bf16.mxu1 %v3711_v12  ;;  %v4235_v41 = vrot.slane %v4223_v37, %v177_v25  ;;  %v3719_v43 = vpack.c.bf16 %v94_v34, %v93_v33  ;;  %v4244_v46 = vrot.slane %v4223_v37, %v181_v29  ;;  %v77_v47 = vld [vmem:[%s6020_s3 + $0x170] sm:$0xff]  ;;  %v78_v48 = vld [vmem:[%s6020_s3 + $0x178] sm:$0xff]  ;;  %v112_v55 = vld [vmem:[%s6020_s3 + $0x288] sm:$0xff]  ;;  %v3689_v61 = vpack.c.bf16 %v46_v45, %v45_v44 }
  0x27   :  { %vm195_vm0 = vcmp.eq.s32.totalorder %v4162_v4, %v4226_v38  ;;  %vm196_vm1 = vcmp.eq.s32.totalorder %v4162_v4, %v4229_v39  ;;  %vm197_vm2 = vcmp.eq.s32.totalorder %v4162_v4, %v4232_v40  ;;  %v143_v56 = vld [vmem:[%s6020_s3 + $0x380] sm:$0xff]  ;;  %v144_v57 = vld [vmem:[%s6020_s3 + $0x388] sm:$0xff]  ;;  %v3721_v62 = vpack.c.bf16 %v78_v48, %v77_v47  ;;  %v113_v9 = vld [vmem:[%s6020_s3 + $0x290] sm:$0xff] }
  0x28   :  { %3682 = vmatpush3.bf16.msra.mxu0 %v3681_v26  ;;  %v2888_v52 = vsel %vm195_vm0, 1.0, %v6022_v50  ;;  %v2889_v53 = vsel %vm196_vm1, 1.0, %v6022_v50  ;;  %2904 = vmatprep.mubr.msk.f32.mxu0 %vm196_vm1, %v6024_v54  ;;  %vm198_vm3 = vcmp.eq.s32.totalorder %v4162_v4, %v4235_v41  ;;  %vm199_vm4 = vcmp.eq.s32.totalorder %v4162_v4, %v4244_v46  ;;  %v95_v0 = vld [vmem:[%s6020_s3 + $0x200] sm:$0xff]  ;;  %v96_v1 = vld [vmem:[%s6020_s3 + $0x208] sm:$0xff]  ;;  %v114_v10 = vld [vmem:[%s6020_s3 + $0x298] sm:$0xff] }
  0x29   :  { %3714 = vmatpush3.bf16.msra.mxu1 %v3713_v27  ;;  %3684 = vmatprep.subr.bf16.mxu0 %v3683_v30  ;;  %v543_v58 = vadd.f32 %v2889_v53, %v2888_v52  ;;  %v2890_v59 = vsel %vm197_vm2, 1.0, %v6022_v50  ;;  %v2891_v63 = vsel %vm198_vm3, 1.0, %v6022_v50  ;;  %v127_v2 = vld [vmem:[%s6020_s3 + $0x300] sm:$0xff]  ;;  %v3723_v6 = vpack.c.bf16 %v112_v55, %v111_v49  ;;  %v128_v8 = vld [vmem:[%s6020_s3 + $0x308] sm:$0xff]  ;;  %v145_v12 = vld [vmem:[%s6020_s3 + $0x390] sm:$0xff] }
  0x2a   :  { %3716 = vmatprep.subr.bf16.mxu1 %v3715_v31  ;;  %2908 = vmatprep.mubr.msk.f32.mxu1 %vm198_vm3, %v6024_v54  ;;  %v3755_v7 = vpack.c.bf16 %v144_v57, %v143_v56  ;;  %v2892_v11 = vsel %vm199_vm4, 1.0, %v6022_v50  ;;  %v146_v13 = vld [vmem:[%s6020_s3 + $0x398] sm:$0xff]  ;;  %v3725_v16 = vpack.c.bf16 %v96_v1, %v95_v0  ;;  %v4318_v17 = vrot.slane %v4223_v37, %v185_v60  ;;  %v97_v20 = vld [vmem:[%s6020_s3 + $0x210] sm:$0xff]  ;;  %v115_v27 = vld [vmem:[%s6020_s3 + $0x2a0] sm:$0xff] }
  0x2b   :  { %v544_v5 = vadd.f32 %v2890_v59, %v543_v58  ;;  %v3757_v18 = vpack.c.bf16 %v128_v8, %v127_v2  ;;  %v3727_v19 = vpack.c.bf16 %v114_v10, %v113_v9  ;;  %v98_v21 = vld [vmem:[%s6020_s3 + $0x218] sm:$0xff]  ;;  %v129_v22 = vld [vmem:[%s6020_s3 + $0x310] sm:$0xff]  ;;  %v4330_v23 = vrot.slane %v4223_v37, %v189_v3  ;;  %v626_v28 = vld [vmem:[%s6019_s2] sm:$0xff] }
  0x2c   :  { %3686 = vmatpush3.bf16.msra.mxu0 %v3685_v35  ;;  %v3759_v25 = vpack.c.bf16 %v146_v13, %v145_v12  ;;  %v130_v26 = vld [vmem:[%s6020_s3 + $0x318] sm:$0xff]  ;;  %vm200_vm5 = vcmp.eq.s32.totalorder %v4162_v4, %v4318_v17  ;;  %v4344_v29 = vadd.s32 8, %v4162_v4  ;;  %v116_v30 = vld [vmem:[%s6020_s3 + $0x2a8] sm:$0xff]  ;;  %v147_v31 = vld [vmem:[%s6020_s3 + $0x3a0] sm:$0xff]  ;;  %v4356_v33 = vrot.slane %v4223_v37, %v193_v14  ;;  %755 = vperm.xlu1 %3805, %v626_v28  }
  0x2d   :  { %3718 = vmatpush3.bf16.msra.mxu1 %v3717_v36  ;;  %3688 = vmatprep.subr.bf16.mxu0 %v3687_v42  ;;  %v545_v15 = vadd.f32 %v2891_v63, %v544_v5  ;;  %v148_v32 = vld [vmem:[%s6020_s3 + $0x3a8] sm:$0xff]  ;;  %vm201_vm6 = vcmp.eq.s32.totalorder %v4162_v4, %v4330_v23  ;;  %v2893_v34 = vsel %vm200_vm5, 1.0, %v6022_v50  ;;  %v3729_v35 = vpack.c.bf16 %v98_v21, %v97_v20  ;;  %v99_v37 = vld [vmem:[%s6020_s3 + $0x220] sm:$0xff]  ;;  %v117_v52 = vld [vmem:[%s6020_s3 + $0x2b0] sm:$0xff] }
  0x2e   :  { %3720 = vmatprep.subr.bf16.mxu1 %v3719_v43  ;;  %v3761_v36 = vpack.c.bf16 %v130_v26, %v129_v22  ;;  %v100_v42 = vld [vmem:[%s6020_s3 + $0x228] sm:$0xff]  ;;  %v3731_v45 = vpack.c.bf16 %v116_v30, %v115_v27  ;;  %v3763_v47 = vpack.c.bf16 %v148_v32, %v147_v31  ;;  %v131_v48 = vld [vmem:[%s6020_s3 + $0x320] sm:$0xff]  ;;  %v2894_v53 = vsel %vm201_vm6, 1.0, %v6022_v50  ;;  %v118_v55 = vld [vmem:[%s6020_s3 + $0x2b8] sm:$0xff] }
  0x2f   :  { %v546_v24 = vadd.f32 %v2892_v11, %v545_v15  ;;  %v627_v44 = vld [vmem:[%s6019_s2 + $0x8] sm:$0xff]  ;;  %vm204_vm7 = vcmp.eq.s32.totalorder %v4344_v29, %v4229_v39  ;;  %v149_v56 = vld [vmem:[%s6020_s3 + $0x3b0] sm:$0xff]  ;;  %v150_v57 = vld [vmem:[%s6020_s3 + $0x3b8] sm:$0xff]  ;;  %vm202_vm8 = vcmp.eq.s32.totalorder %v4162_v4, %v4356_v33  ;;  %vm203_vm9 = vcmp.eq.s32.totalorder %v4344_v29, %v4226_v38 }
  0x30   :  { %3690 = vmatpush3.bf16.msra.mxu0 %v3689_v61  ;;  %v132_v49 = vld [vmem:[%s6020_s3 + $0x328] sm:$0xff]  ;;  %758 = vperm.xlu1 %3805, %v627_v44   ;;  %vm206_vm10 = vcmp.eq.s32.totalorder %v4344_v29, %v4235_v41  ;;  %v3733_v39 = vpack.c.bf16 %v100_v42, %v99_v37  ;;  %v628_v58 = vld [vmem:[%s6019_s2 + $0x10] sm:$0xff]  ;;  %vm205_vm11 = vcmp.eq.s32.totalorder %v4344_v29, %v4232_v40  ;;  %v102_v61 = vld [vmem:[%s6020_s3 + $0x238] sm:$0xff]  ;;  %v2895_v63 = vsel %vm202_vm8, 1.0, %v6022_v50 }
  0x31   :  { %3722 = vmatpush3.bf16.msra.mxu1 %v3721_v62  ;;  %3724 = vmatprep.subr.bf16.mxu0 %v3723_v6  ;;  %v547_v43 = vadd.f32 %v2893_v34, %v546_v24  ;;  %v3765_v59 = vpack.c.bf16 %v132_v49, %v131_v48  ;;  %v3735_v38 = vpack.c.bf16 %v118_v55, %v117_v52  ;;  %v101_v41 = vld [vmem:[%s6020_s3 + $0x230] sm:$0xff]  ;;  %v134_v0 = vld [vmem:[%s6020_s3 + $0x338] sm:$0xff]  ;;  %v119_v1 = vld [vmem:[%s6020_s3 + $0x2c0] sm:$0xff]  ;;  %vm1522_vm1 = vcmask 72704  }
  0x32   :  { %3756 = vmatprep.subr.bf16.mxu1 %v3755_v7  ;;  %v3767_v62 = vpack.c.bf16 %v150_v57, %v149_v56  ;;  %v133_v40 = vld [vmem:[%s6020_s3 + $0x330] sm:$0xff]  ;;  %v120_v2 = vld [vmem:[%s6020_s3 + $0x2c8] sm:$0xff]  ;;  %v151_v3 = vld [vmem:[%s6020_s3 + $0x3c0] sm:$0xff]  ;;  %v3737_v7 = vpack.c.bf16 %v102_v61, %v101_v41  ;;  %vm208_vm12 = vcmp.eq.s32.totalorder %v4344_v29, %v4318_v17  ;;  %vm210_vm13 = vcmp.eq.s32.totalorder %v4344_v29, %v4356_v33 }
  0x33   :  { %2905 = vmatmul.mubr.msk.f32.vlgmr.msra.gmra.mrb[0].mxu0 %vm195_vm0, %v6024_v54  ;;  %v548_v60 = vadd.f32 %v2894_v53, %v547_v43  ;;  %v152_v5 = vld [vmem:[%s6020_s3 + $0x3c8] sm:$0xff]  ;;  %v629_v6 = vld [vmem:[%s6019_s2 + $0x18] sm:$0xff]  ;;  %v3769_v9 = vpack.c.bf16 %v134_v0, %v133_v40  ;;  %v3739_v10 = vpack.c.bf16 %v120_v2, %v119_v1  ;;  %v103_v11 = vld [vmem:[%s6020_s3 + $0x240] sm:$0xff]  ;;  %vm207_vm15 = vcmp.eq.s32.totalorder %v4344_v29, %v4244_v46 }
  0x34   :  { %2909 = vmatmul.mubr.msk.f32.vlgmr.msra.gmra.mrb[0].mxu1 %vm197_vm2, %v6024_v54  ;;  %3726 = vmatpush3.bf16.msra.mxu0 %v3725_v16  ;;  %v104_v12 = vld [vmem:[%s6020_s3 + $0x248] sm:$0xff]  ;;  %v135_v13 = vld [vmem:[%s6020_s3 + $0x340] sm:$0xff]  ;;  %v3771_v14 = vpack.c.bf16 %v152_v5, %v151_v3  ;;  %v121_v16 = vld [vmem:[%s6020_s3 + $0x2d0] sm:$0xff]  ;;  %vm209_vm0 = vcmp.eq.s32.totalorder %v4344_v29, %v4330_v23 }
  0x35   :  { %3758 = vmatpush3.bf16.msra.mxu1 %v3757_v18  ;;  %3728 = vmatprep.subr.bf16.mxu0 %v3727_v19  ;;  %v549_v8 = vadd.f32 %v2895_v63, %v548_v60  ;;  %v136_v15 = vld [vmem:[%s6020_s3 + $0x348] sm:$0xff]  ;;  %v122_v18 = vld [vmem:[%s6020_s3 + $0x2d8] sm:$0xff]  ;;  %v153_v19 = vld [vmem:[%s6020_s3 + $0x3d0] sm:$0xff]  ;;  %v3741_v22 = vpack.c.bf16 %v104_v12, %v103_v11 }
  0x36   :  { %3760 = vmatprep.subr.bf16.mxu1 %v3759_v25  ;;  %2906 = vmatprep.mubr.msk.f32.mxu0 %vm204_vm7, %v6024_v54  ;;  %v154_v20 = vld [vmem:[%s6020_s3 + $0x3d8] sm:$0xff]  ;;  %v630_v21 = vld [vmem:[%s6019_s2 + $0x20] sm:$0xff]  ;;  %v3773_v24 = vpack.c.bf16 %v136_v15, %v135_v13  ;;  %v3743_v25 = vpack.c.bf16 %v122_v18, %v121_v16  ;;  %v105_v26 = vld [vmem:[%s6020_s3 + $0x250] sm:$0xff] }
  0x37   :  { %2907 = vmatmul.mubr.msk.f32.gmra.mrb[2].mxu0 %vm203_vm9, %v6024_v54  ;;  %2910 = vmatprep.mubr.msk.f32.mxu1 %vm206_vm10, %v6024_v54  ;;  %v106_v27 = vld [vmem:[%s6020_s3 + $0x258] sm:$0xff]  ;;  %v137_v28 = vld [vmem:[%s6020_s3 + $0x350] sm:$0xff]  ;;  %v3775_v30 = vpack.c.bf16 %v154_v20, %v153_v19  ;;  %v123_v32 = vld [vmem:[%s6020_s3 + $0x2e0] sm:$0xff] }
  0x38   :  { %3730 = vmatpush3.bf16.msra.mxu0 %v3729_v35  ;;  %761 = vperm.xlu1 %3805, %v628_v58   ;;  %v138_v31 = vld [vmem:[%s6020_s3 + $0x358] sm:$0xff]  ;;  %v124_v34 = vld [vmem:[%s6020_s3 + $0x2e8] sm:$0xff]  ;;  %v155_v35 = vld [vmem:[%s6020_s3 + $0x3e0] sm:$0xff]  ;;  %v3745_v42 = vpack.c.bf16 %v106_v27, %v105_v26 }
  0x39   :  { %3762 = vmatpush3.bf16.msra.mxu1 %v3761_v36  ;;  %3732 = vmatprep.subr.bf16.mxu0 %v3731_v45  ;;  %v156_v36 = vld [vmem:[%s6020_s3 + $0x3e8] sm:$0xff]  ;;  %v3777_v43 = vpack.c.bf16 %v138_v31, %v137_v28  ;;  %v3747_v44 = vpack.c.bf16 %v124_v34, %v123_v32  ;;  %v107_v45 = vld [vmem:[%s6020_s3 + $0x260] sm:$0xff]  ;;  %v125_v53 = vld [vmem:[%s6020_s3 + $0x2f0] sm:$0xff] }
  0x3a   :  { %3764 = vmatprep.subr.bf16.mxu1 %v3763_v47  ;;  %2911 = vmatmul.mubr.msk.f32.gmra.mrb[2].mxu1 %vm205_vm11, %v6024_v54  ;;  %v631_v37 = vld [vmem:[%s6019_s2 + $0x28] sm:$0xff]  ;;  %v139_v48 = vld [vmem:[%s6020_s3 + $0x360] sm:$0xff]  ;;  %v3779_v49 = vpack.c.bf16 %v156_v36, %v155_v35  ;;  %v126_v55 = vld [vmem:[%s6020_s3 + $0x2f8] sm:$0xff] }
  0x3b   :  { %2912 = vmatprep.mubr.msk.f32.mxu0 %vm200_vm5, %v6024_v54  ;;  %2916 = vmatprep.mubr.msk.f32.mxu1 %vm202_vm8, %v6024_v54  ;;  %v108_v47 = vld [vmem:[%s6020_s3 + $0x268] sm:$0xff]  ;;  %v157_v56 = vld [vmem:[%s6020_s3 + $0x3f0] sm:$0xff]  ;;  %v158_v57 = vld [vmem:[%s6020_s3 + $0x3f8] sm:$0xff]  ;;  %v3751_v60 = vpack.c.bf16 %v126_v55, %v125_v53  ;;  %vm552_vm5 = vcmask 1040384  }
  0x3c   :  { %3734 = vmatpush3.bf16.msra.mxu0 %v3733_v39  ;;  %764 = vperm.xlu1 %3805, %v629_v6   ;;  %v140_v52 = vld [vmem:[%s6020_s3 + $0x368] sm:$0xff]  ;;  %v633_v39 = vld [vmem:[%s6019_s2 + $0x38] sm:$0xff]  ;;  %v3749_v58 = vpack.c.bf16 %v108_v47, %v107_v45  ;;  %v3783_v61 = vpack.c.bf16 %v158_v57, %v157_v56  ;;  %v634_v40 = vld [vmem:[%s6019_s2 + $0x40] sm:$0xff] }
  0x3d   :  { %3766 = vmatpush3.bf16.msra.mxu1 %v3765_v59  ;;  %3736 = vmatprep.subr.bf16.mxu0 %v3735_v38  ;;  %v3781_v59 = vpack.c.bf16 %v140_v52, %v139_v48  ;;  %v109_v38 = vld [vmem:[%s6020_s3 + $0x270] sm:$0xff]  ;;  %v110_v41 = vld [vmem:[%s6020_s3 + $0x278] sm:$0xff]  ;;  %v643_v3 = vld [vmem:[%s6019_s2 + $0x88] sm:$0xff] }
  0x3e   :  { %3768 = vmatprep.subr.bf16.mxu1 %v3767_v62  ;;  %v141_v62 = vld [vmem:[%s6020_s3 + $0x370] sm:$0xff]  ;;  %v142_v63 = vld [vmem:[%s6020_s3 + $0x378] sm:$0xff]  ;;  %v3753_v0 = vpack.c.bf16 %v110_v41, %v109_v38  ;;  %v638_v5 = vld [vmem:[%s6019_s2 + $0x60] sm:$0xff] }
  0x3f   :  { %v3785_v1 = vpack.c.bf16 %v142_v63, %v141_v62  ;;  %v636_v2 = vld [vmem:[%s6019_s2 + $0x50] sm:$0xff]  ;;  %v645_v6 = vld [vmem:[%s6019_s2 + $0x98] sm:$0xff]  ;;  %v642_v4 = vld [vmem:[%s6019_s2 + $0x80] sm:$0xff] }
  0x40   :  { %3738 = vmatpush3.bf16.msra.mxu0 %v3737_v7  ;;  %550 = vadd.xlane.f32.xlu0 %v549_v8  ;;  %v640_v7 = vld [vmem:[%s6019_s2 + $0x70] sm:$0xff]  ;;  %v647_v8 = vld [vmem:[%s6019_s2 + $0xa8] sm:$0xff]  ;;  %v646_v12 = vld [vmem:[%s6019_s2 + $0xa0] sm:$0xff] }
  0x41   :  { %3770 = vmatpush3.bf16.msra.mxu1 %v3769_v9  ;;  %3740 = vmatprep.subr.bf16.mxu0 %v3739_v10  ;;  %v649_v9 = vld [vmem:[%s6019_s2 + $0xb8] sm:$0xff]  ;;  %v644_v10 = vld [vmem:[%s6019_s2 + $0x90] sm:$0xff]  ;;  %v651_v11 = vld [vmem:[%s6019_s2 + $0xc8] sm:$0xff] }
  0x42   :  { %3772 = vmatprep.subr.bf16.mxu1 %v3771_v14  ;;  %767 = vperm.xlu1 %3805, %v630_v21   ;;  %v691_v13 = vld [vmem:[%s6019_s2 + $0x208] sm:$0xff]  ;;  %v648_v14 = vld [vmem:[%s6019_s2 + $0xb0] sm:$0xff]  ;;  %v693_v15 = vld [vmem:[%s6019_s2 + $0x218] sm:$0xff] }
  0x43   :  { %v650_v16 = vld [vmem:[%s6019_s2 + $0xc0] sm:$0xff]  ;;  %v695_v18 = vld [vmem:[%s6019_s2 + $0x228] sm:$0xff]  ;;  %v697_v20 = vld [vmem:[%s6019_s2 + $0x238] sm:$0xff] }
  0x44   :  { %3742 = vmatpush3.bf16.msra.mxu0 %v3741_v22  ;;  %v690_v19 = vld [vmem:[%s6019_s2 + $0x200] sm:$0xff]  ;;  %v692_v21 = vld [vmem:[%s6019_s2 + $0x210] sm:$0xff]  ;;  %v699_v22 = vld [vmem:[%s6019_s2 + $0x248] sm:$0xff] }
  0x45   :  { %3774 = vmatpush3.bf16.msra.mxu1 %v3773_v24  ;;  %3744 = vmatprep.subr.bf16.mxu0 %v3743_v25  ;;  %v694_v24 = vld [vmem:[%s6019_s2 + $0x220] sm:$0xff]  ;;  %v701_v25 = vld [vmem:[%s6019_s2 + $0x258] sm:$0xff]  ;;  %v696_v26 = vld [vmem:[%s6019_s2 + $0x230] sm:$0xff] }
  0x46   :  { %3776 = vmatprep.subr.bf16.mxu1 %v3775_v30  ;;  %770 = vperm.xlu1 %3805, %v631_v37   ;;  %v703_v27 = vld [vmem:[%s6019_s2 + $0x268] sm:$0xff]  ;;  %v698_v28 = vld [vmem:[%s6019_s2 + $0x240] sm:$0xff]  ;;  %v705_v30 = vld [vmem:[%s6019_s2 + $0x278] sm:$0xff] }
  0x47   :  { %v700_v31 = vld [vmem:[%s6019_s2 + $0x250] sm:$0xff]  ;;  %v707_v32 = vld [vmem:[%s6019_s2 + $0x288] sm:$0xff]  ;;  %v702_v34 = vld [vmem:[%s6019_s2 + $0x260] sm:$0xff] }
  0x48   :  { %3746 = vmatpush3.bf16.msra.mxu0 %v3745_v42  ;;  %v709_v35 = vld [vmem:[%s6019_s2 + $0x298] sm:$0xff]  ;;  %v704_v36 = vld [vmem:[%s6019_s2 + $0x270] sm:$0xff]  ;;  %v711_v37 = vld [vmem:[%s6019_s2 + $0x2a8] sm:$0xff] }
  0x49   :  { %3778 = vmatpush3.bf16.msra.mxu1 %v3777_v43  ;;  %3748 = vmatprep.subr.bf16.mxu0 %v3747_v44  ;;  %v706_v42 = vld [vmem:[%s6019_s2 + $0x280] sm:$0xff]  ;;  %v713_v43 = vld [vmem:[%s6019_s2 + $0x2b8] sm:$0xff]  ;;  %v708_v44 = vld [vmem:[%s6019_s2 + $0x290] sm:$0xff] }
  0x4a   :  { %3780 = vmatprep.subr.bf16.mxu1 %v3779_v49  ;;  %776 = vperm.xlu1 %3805, %v633_v39   ;;  %v710_v45 = vld [vmem:[%s6019_s2 + $0x2a0] sm:$0xff]  ;;  %v712_v47 = vld [vmem:[%s6019_s2 + $0x2b0] sm:$0xff]  ;;  %v4678_v49 = vand.u32 127, %v159_v51 }
  0x4b   :  { %v714_v48 = vld [vmem:[%s6019_s2 + $0x2c0] sm:$0xff] }
  0x4c   :  { %3750 = vmatpush3.bf16.msra.mxu0 %v3749_v58  ;;  %vm586_vm3 = vcmp.ge.s32.totalorder %v4678_v49, 1 }
  0x4d   :  { %3782 = vmatpush3.bf16.msra.mxu1 %v3781_v59  ;;  %3752 = vmatprep.subr.bf16.mxu0 %v3751_v60 }
  0x4e   :  { %3784 = vmatprep.subr.bf16.mxu1 %v3783_v61  ;;  %779 = vperm.xlu1 %3805, %v634_v40  }
  0x50   :  { %3754 = vmatpush3.bf16.msra.mxu0 %v3753_v0 }
  0x51   :  { %3786 = vmatpush3.bf16.msra.mxu1 %v3785_v1 }
  0x52   :  { %785 = vperm.xlu1 %3805, %v636_v2  }
  0x53   :  { %2913 = vmatmul.mubr.msk.f32.vlgmr.msra.gmra.mrb[4].mxu0 %vm199_vm4, %v6024_v54  ;;  %vm605_vm4 = vcmp.lt.s32.totalorder %v4678_v49, 127 }
  0x54   :  { %2917 = vmatmul.mubr.msk.f32.vlgmr.msra.gmra.mrb[4].mxu1 %vm201_vm6, %v6024_v54  ;;  %2914 = vmatprep.mubr.msk.f32.mxu0 %vm208_vm12, %v6024_v54  ;;  %vm3985_vm6 = vmmov 1  }
  0x55   :  { %2918 = vmatprep.mubr.msk.f32.mxu1 %vm210_vm13, %v6024_v54  ;;  %vm3788_vm7 = vmpackc.low %vm552_vm5, %vm3985_vm6 }
  0x56   :  { %806 = vperm.xlu0 %3806, %v643_v3   ;;  %791 = vperm.xlu1 %3805, %v638_v5  }
  0x57   :  { %2915 = vmatmul.mubr.msk.f32.gmra.mrb[6].mxu0 %vm207_vm15, %v6024_v54 }
  0x58   :  { %2919 = vmatmul.mubr.msk.f32.gmra.mrb[6].mxu1 %vm209_vm0, %v6024_v54  ;;  %v744_v54 = vld [vmem:[%s6019_s2 + $0x3b0] sm:$0xff] }
  0x5a   :  { %812 = vperm.xlu0 %3806, %v645_v6   ;;  %797 = vperm.xlu1 %3805, %v640_v7  }
  0x5e   :  { %818 = vperm.xlu0 %3806, %v647_v8   ;;  %803 = vperm.xlu1 %3805, %v642_v4  }
  0x62   :  { %824 = vperm.xlu0 %3806, %v649_v9   ;;  %809 = vperm.xlu1 %3805, %v644_v10  }
  0x66   :  { %830 = vperm.xlu0 %3806, %v651_v11   ;;  %815 = vperm.xlu1 %3805, %v646_v12  }
  0x6a   :  { %950 = vperm.xlu0 %3806, %v691_v13   ;;  %821 = vperm.xlu1 %3805, %v648_v14  }
  0x6e   :  { %956 = vperm.xlu0 %3806, %v693_v15   ;;  %827 = vperm.xlu1 %3805, %v650_v16  }
  0x72   :  { %962 = vperm.xlu0 %3806, %v695_v18   ;;  %947 = vperm.xlu1 %3805, %v690_v19  }
  0x76   :  { %968 = vperm.xlu0 %3806, %v697_v20   ;;  %953 = vperm.xlu1 %3805, %v692_v21  }
  0x7a   :  { %974 = vperm.xlu0 %3806, %v699_v22   ;;  %959 = vperm.xlu1 %3805, %v694_v24  }
  0x7e   :  { %980 = vperm.xlu0 %3806, %v701_v25   ;;  %965 = vperm.xlu1 %3805, %v696_v26  }
  0x82   :  { %986 = vperm.xlu0 %3806, %v703_v27   ;;  %971 = vperm.xlu1 %3805, %v698_v28   ;;  %v652_v28 = vld [vmem:[%s6019_s2 + $0xd0] sm:$0xff] }
  0x86   :  { %992 = vperm.xlu0 %3806, %v705_v30   ;;  %977 = vperm.xlu1 %3805, %v700_v31   ;;  %v715_v30 = vld [vmem:[%s6019_s2 + $0x2c8] sm:$0xff]  ;;  %v653_v31 = vld [vmem:[%s6019_s2 + $0xd8] sm:$0xff] }
  0x8a   :  { %998 = vperm.xlu0 %3806, %v707_v32   ;;  %983 = vperm.xlu1 %3805, %v702_v34   ;;  %v716_v32 = vld [vmem:[%s6019_s2 + $0x2d0] sm:$0xff]  ;;  %v654_v34 = vld [vmem:[%s6019_s2 + $0xe0] sm:$0xff] }
  0x8e   :  { %1004 = vperm.xlu0 %3806, %v709_v35   ;;  %989 = vperm.xlu1 %3805, %v704_v36   ;;  %v717_v35 = vld [vmem:[%s6019_s2 + $0x2d8] sm:$0xff]  ;;  %v655_v36 = vld [vmem:[%s6019_s2 + $0xe8] sm:$0xff] }
  0x90   :  { %v4728_v63 = vpop.permute.xlu0 %773 }
  0x92   :  { %1010 = vperm.xlu0 %3806, %v711_v37   ;;  %995 = vperm.xlu1 %3805, %v706_v42   ;;  %v718_v37 = vld [vmem:[%s6019_s2 + $0x2e0] sm:$0xff] }
  0x94   :  { %v4730_v40 = vpop.permute.xlu0 %782 }
  0x96   :  { %1016 = vperm.xlu0 %3806, %v713_v43   ;;  %1001 = vperm.xlu1 %3805, %v708_v44   ;;  %v656_v43 = vld [vmem:[%s6019_s2 + $0xf0] sm:$0xff]  ;;  %v719_v44 = vld [vmem:[%s6019_s2 + $0x2e8] sm:$0xff] }
  0x98   :  { %v4732_v7 = vpop.permute.xlu0 %788 }
  0x9a   :  { %1007 = vperm.xlu1 %3805, %v710_v45  }
  0x9c   :  { %v4734_v12 = vpop.permute.xlu0 %794 }
  0x9e   :  { %1013 = vperm.xlu1 %3805, %v712_v47   ;;  %v657_v47 = vld [vmem:[%s6019_s2 + $0xf8] sm:$0xff] }
  0xa0   :  { %v4736_v13 = vpop.permute.xlu0 %800 }
  0xa2   :  { %1019 = vperm.xlu1 %3805, %v714_v48   ;;  %v720_v48 = vld [vmem:[%s6019_s2 + $0x2f0] sm:$0xff] }
  0xab   :  { %v756_v52 = vpop.permute.xlu1 %755 }
  0xac   :  { %vm1138_vm14 = vcmp.eq.s32.totalorder %v4678_v49, %v756_v52  ;;  %v658_v52 = vld [vmem:[%s6019_s2 + $0x100] sm:$0xff] }
  0xad   :  { %v2924_v53 = vsel %vm1138_vm14, 1.0, %v6022_v50 }
  0xae   :  { %3467 = vmatprep.mubr.msk.f32.mxu0 %vm1522_vm1, %v2924_v53  ;;  %v721_v53 = vld [vmem:[%s6019_s2 + $0x2f8] sm:$0xff] }
  0xaf   :  { %v4692_v51 = vpop.permute.xlu1 %758 }
  0xb0   :  { %vm1139_vm8 = vcmp.eq.s32.totalorder %v4678_v49, %v4692_v51  ;;  %v6029_v51 = vmov 0.0  }
  0xb7   :  { %v4697_v17 = vpop.permute.xlu1 %761 }
  0xb8   :  { %vm1140_vm10 = vcmp.eq.s32.totalorder %v4678_v49, %v4697_v17 }
  0xb9   :  { %v2926_v17 = vsel %vm1140_vm10, 1.0, %v6029_v51 }
  0xbb   :  { %v4699_v33 = vpop.permute.xlu1 %764 }
  0xbc   :  { %vm1141_vm12 = vcmp.eq.s32.totalorder %v4678_v49, %v4699_v33 }
  0xbd   :  { %v2927_v33 = vsel %vm1141_vm12, 1.0, %v6029_v51 }
  0xc1   :  { %v4701_v55 = vpop.permute.xlu1 %767 }
  0xc2   :  { %vm1142_vm14 = vcmp.eq.s32.totalorder %v4678_v49, %v4701_v55 }
  0xc5   :  { %v4703_v56 = vpop.permute.xlu1 %770 }
  0xc6   :  { %vm1143_vm0 = vcmp.eq.s32.totalorder %v4678_v49, %v4703_v56 }
  0xc7   :  { %v2929_v56 = vsel %vm1143_vm0, 1.0, %v6029_v51 }
  0xc9   :  { %v4705_v46 = vpop.permute.xlu1 %776 }
  0xca   :  { %vm1145_vm5 = vcmp.eq.s32.totalorder %v4678_v49, %v4705_v46 }
  0xcb   :  { %v2931_v46 = vsel %vm1145_vm5, 1.0, %v6029_v51 }
  0xcd   :  { %v4707_v23 = vpop.permute.xlu1 %779  ;;  %v551_v14 = vpop.xlane.xlu0 %550 }
  0xce   :  { %v570_v15 = vmax.f32 %v551_v14, 1.0  ;;  %v663_v14 = vld [vmem:[%s6019_s2 + $0x128] sm:$0xff] }
  0xd0   :  { %3807 = vrcp.f32 %v570_v15  ;;  %v726_v15 = vld [vmem:[%s6019_s2 + $0x320] sm:$0xff] }
  0xd1   :  { %v4709_v29 = vpop.permute.xlu1 %785 }
  0xd5   :  { %v4711_v57 = vpop.permute.xlu1 %791  ;;  %v4766_v42 = vpop.permute.xlu0 %806 }
  0xd9   :  { %v4713_v39 = vpop.permute.xlu1 %797  ;;  %v4774_v45 = vpop.permute.xlu0 %812 }
  0xda   :  { %v3808_v25 = vpop.eup %3807 }
  0xdd   :  { %v4715_v58 = vpop.permute.xlu1 %803 }
  0xe1   :  { %v4717_v59 = vpop.permute.xlu1 %809 }
  0xe5   :  { %v4719_v60 = vpop.permute.xlu1 %815 }
  0xe9   :  { %v4721_v38 = vpop.permute.xlu1 %821 }
  0xed   :  { %v4723_v41 = vpop.permute.xlu1 %827 }
  0xee   :  { %6025 = vst [vmem:[#allocation8_spill] sm:$0xff] %v4723_v41 }
  0xf1   :  { %v948_v61 = vpop.permute.xlu1 %947 }
  0xf2   :  { %vm1202_vm2 = vcmp.eq.s32.totalorder %v4678_v49, %v948_v61  ;;  %v4788_v61 = vpop.permute.xlu0 %818 }
  0xf3   :  { %v2988_v62 = vsel %vm1202_vm2, 1.0, %v6022_v50  ;;  %v681_v50 = vld [vmem:[%s6019_s2 + $0x1b8] sm:$0xff] }
  0xf4   :  { %3563 = vmatprep.mubr.msk.f32.mxu1 %vm1522_vm1, %v2988_v62  ;;  %v659_v62 = vld [vmem:[%s6019_s2 + $0x108] sm:$0xff] }
 0x106   :  { %v3213_v0 = vpop.f32.mrb[0].mxu0 }
 0x107   :  { %v3251_v1 = vpop.f32.mrb[0].mxu1  ;;  %v3214_v2 = vpop.f32.mrb[1].mxu0 }
 0x108   :  { %v3252_v3 = vpop.f32.mrb[1].mxu1  ;;  %v3215_v5 = vadd.f32 %v3214_v2, %v3213_v0  ;;  %v722_v0 = vld [vmem:[%s6019_s2 + $0x300] sm:$0xff]  ;;  %v660_v2 = vld [vmem:[%s6019_s2 + $0x110] sm:$0xff] }
 0x109   :  { %v3253_v6 = vadd.f32 %v3252_v3, %v3251_v1  ;;  %v4796_v1 = vpop.permute.xlu0 %824  ;;  %v723_v3 = vld [vmem:[%s6019_s2 + $0x308] sm:$0xff] }
 0x10a   :  { %v3216_v4 = vpop.f32.mrb[2].mxu0 }
 0x10b   :  { %v385_v8 = vadd.f32 %v3253_v6, %v3215_v5  ;;  %v3217_v9 = vpop.f32.mrb[3].mxu0  ;;  %v661_v5 = vld [vmem:[%s6019_s2 + $0x118] sm:$0xff]  ;;  %v724_v6 = vld [vmem:[%s6019_s2 + $0x310] sm:$0xff]  ;;  %v662_v4 = vld [vmem:[%s6019_s2 + $0x120] sm:$0xff] }
 0x10c   :  { %v725_v9 = vld [vmem:[%s6019_s2 + $0x318] sm:$0xff] }
 0x10d   :  { %v3254_v10 = vpop.f32.mrb[2].mxu1 }
 0x10e   :  { %v3255_v11 = vpop.f32.mrb[3].mxu1 }
 0x10f   :  { %v4820_v11 = vpop.permute.xlu1 %953 }
 0x110   :  { %vm1204_vm11 = vcmp.eq.s32.totalorder %v4678_v49, %v4820_v11 }
 0x111   :  { %v2990_v11 = vsel %vm1204_vm11, 1.0, %v6029_v51  ;;  %vm1148_vm11 = vcmp.eq.s32.totalorder %v4678_v49, %v4709_v29 }
 0x112   :  { %v2934_v29 = vsel %vm1148_vm11, 1.0, %v6029_v51 }
 0x126   :  { %v3289_v16 = vpop.f32.mrb[4].mxu0 }
 0x127   :  { %v3290_v18 = vpop.f32.mrb[5].mxu0  ;;  %v3327_v19 = vpop.f32.mrb[4].mxu1 }
 0x128   :  { %v3291_v20 = vadd.f32 %v3290_v18, %v3289_v16  ;;  %v3328_v21 = vpop.f32.mrb[5].mxu1  ;;  %v664_v16 = vld [vmem:[%s6019_s2 + $0x130] sm:$0xff]  ;;  %v727_v18 = vld [vmem:[%s6019_s2 + $0x328] sm:$0xff] }
 0x129   :  { %v3329_v22 = vadd.f32 %v3328_v21, %v3327_v19  ;;  %v665_v21 = vld [vmem:[%s6019_s2 + $0x138] sm:$0xff] }
 0x12a   :  { %v460_v24 = vadd.f32 %v3291_v20, %v385_v8  ;;  %v4810_v8 = vpop.permute.xlu0 %830  ;;  %v4836_v20 = vpop.permute.xlu1 %959 }
 0x12b   :  { %6026 = vst [vmem:[#allocation9_spill] sm:$0xff] %v4810_v8  ;;  %vm1206_vm15 = vcmp.eq.s32.totalorder %v4678_v49, %v4836_v20 }
 0x12c   :  { %v535_v26 = vadd.f32 %v3329_v22, %v460_v24  ;;  %v728_v22 = vld [vmem:[%s6019_s2 + $0x330] sm:$0xff]  ;;  %v2992_v55 = vsel %vm1206_vm15, 1.0, %v6029_v51  ;;  %vm1150_vm15 = vcmp.eq.s32.totalorder %v4678_v49, %v4711_v57 }
 0x12d   :  { %v2936_v57 = vsel %vm1150_vm15, 1.0, %v6029_v51 }
 0x12e   :  { %v4738_v27 = vmul.f32 %v3808_v25, %v535_v26  ;;  %v4818_v10 = vpop.permute.xlu0 %950  ;;  %v4846_v25 = vpop.permute.xlu1 %965  ;;  %v666_v26 = vld [vmem:[%s6019_s2 + $0x140] sm:$0xff] }
 0x12f   :  { %vm1203_vm9 = vcmp.eq.s32.totalorder %v4678_v49, %v4818_v10 }
 0x130   :  { %597 = vrot.lane.b32.xlu1 %v4738_v27, %s3983_s20  ;;  %578 = vrot.lane.b32.xlu0 %v4738_v27, %s3984_s21  ;;  %s2920_s20 = sld [smem:[#allocation2 + $0x1]]  ;;  %v2989_v10 = vsel %vm1203_vm9, 1.0, %v6029_v51  ;;  %vm1147_vm9 = vcmp.eq.s32.totalorder %v4678_v49, %v4730_v40 }
 0x132   :  { %v4834_v19 = vpop.permute.xlu0 %956 }
 0x133   :  { %vm1205_vm13 = vcmp.eq.s32.totalorder %v4678_v49, %v4834_v19 }
 0x134   :  { %833 = vperm.xlu1 %3805, %v652_v28   ;;  %1022 = vperm.xlu0 %3806, %v715_v30   ;;  %v729_v28 = vld [vmem:[%s6019_s2 + $0x338] sm:$0xff]  ;;  %v667_v30 = vld [vmem:[%s6019_s2 + $0x148] sm:$0xff]  ;;  %v2991_v19 = vsel %vm1205_vm13, 1.0, %v6029_v51  ;;  %vm1149_vm13 = vcmp.eq.s32.totalorder %v4678_v49, %v4732_v7 }
 0x136   :  { %v4844_v24 = vpop.permute.xlu0 %962 }
 0x137   :  { %vm1207_vm2 = vcmp.eq.s32.totalorder %v4678_v49, %v4844_v24 }
 0x138   :  { %836 = vperm.xlu1 %3805, %v653_v31   ;;  %1025 = vperm.xlu0 %3806, %v716_v32   ;;  %v730_v31 = vld [vmem:[%s6019_s2 + $0x340] sm:$0xff]  ;;  %v2993_v24 = vsel %vm1207_vm2, 1.0, %v6029_v51  ;;  %vm1151_vm2 = vcmp.eq.s32.totalorder %v4678_v49, %v4734_v12 }
 0x13a   :  { %v4860_v32 = vpop.permute.xlu0 %968 }
 0x13b   :  { %vm1209_vm6 = vcmp.eq.s32.totalorder %v4678_v49, %v4860_v32 }
 0x13c   :  { %839 = vperm.xlu1 %3805, %v654_v34   ;;  %1028 = vperm.xlu0 %3806, %v717_v35   ;;  %v4862_v34 = vpop.permute.xlu1 %971  ;;  %v668_v35 = vld [vmem:[%s6019_s2 + $0x150] sm:$0xff]  ;;  %v2995_v32 = vsel %vm1209_vm6, 1.0, %v6029_v51  ;;  %vm1153_vm6 = vcmp.eq.s32.totalorder %v4678_v49, %v4736_v13 }
 0x140   :  { %842 = vperm.xlu1 %3805, %v655_v36   ;;  %1031 = vperm.xlu0 %3806, %v718_v37   ;;  %v731_v36 = vld [vmem:[%s6019_s2 + $0x348] sm:$0xff]  ;;  %v4870_v37 = vpop.permute.xlu0 %974 }
 0x141   :  { %vm1211_vm10 = vcmp.eq.s32.totalorder %v4678_v49, %v4870_v37  ;;  %v2933_v37 = vsel %vm1147_vm9, 1.0, %v6029_v51 }
 0x144   :  { %845 = vperm.xlu1 %3805, %v656_v43   ;;  %1034 = vperm.xlu0 %3806, %v719_v44   ;;  %v4872_v43 = vpop.permute.xlu1 %977  ;;  %v669_v44 = vld [vmem:[%s6019_s2 + $0x158] sm:$0xff] }
 0x145   :  { %vm1212_vm12 = vcmp.eq.s32.totalorder %v4678_v49, %v4872_v43 }
 0x146   :  { %v2998_v43 = vsel %vm1212_vm12, 1.0, %v6029_v51  ;;  %vm1156_vm12 = vcmp.eq.s32.totalorder %v4678_v49, %v4717_v59 }
 0x147   :  { %v2942_v59 = vsel %vm1156_vm12, 1.0, %v6029_v51 }
 0x148   :  { %848 = vperm.xlu1 %3805, %v657_v47   ;;  %1037 = vperm.xlu0 %3806, %v720_v48   ;;  %v732_v47 = vld [vmem:[%s6019_s2 + $0x350] sm:$0xff]  ;;  %v670_v48 = vld [vmem:[%s6019_s2 + $0x160] sm:$0xff] }
 0x14c   :  { %851 = vperm.xlu1 %3805, %v658_v52   ;;  %1040 = vperm.xlu0 %3806, %v721_v53   ;;  %v733_v52 = vld [vmem:[%s6019_s2 + $0x358] sm:$0xff]  ;;  %v4886_v53 = vpop.permute.xlu0 %980 }
 0x150   :  { %854 = vperm.xlu1 %3805, %v659_v62   ;;  %1043 = vperm.xlu0 %3806, %v722_v0   ;;  %v4888_v62 = vpop.permute.xlu1 %983  ;;  %v671_v0 = vld [vmem:[%s6019_s2 + $0x168] sm:$0xff] }
 0x151   :  { %vm1214_vm0 = vcmp.eq.s32.totalorder %v4678_v49, %v4888_v62 }
 0x152   :  { %v3000_v62 = vsel %vm1214_vm0, 1.0, %v6029_v51  ;;  %vm1158_vm0 = vcmp.eq.s32.totalorder %v4678_v49, %v4719_v60 }
 0x153   :  { %v2944_v60 = vsel %vm1158_vm0, 1.0, %v6029_v51 }
 0x154   :  { %857 = vperm.xlu1 %3805, %v660_v2   ;;  %1046 = vperm.xlu0 %3806, %v723_v3   ;;  %v734_v2 = vld [vmem:[%s6019_s2 + $0x360] sm:$0xff]  ;;  %v4896_v3 = vpop.permute.xlu0 %986 }
 0x158   :  { %860 = vperm.xlu1 %3805, %v661_v5   ;;  %1049 = vperm.xlu0 %3806, %v724_v6   ;;  %v4898_v5 = vpop.permute.xlu1 %989  ;;  %v672_v6 = vld [vmem:[%s6019_s2 + $0x170] sm:$0xff] }
 0x159   :  { %vm1216_vm5 = vcmp.eq.s32.totalorder %v4678_v49, %v4898_v5 }
 0x15a   :  { %v3002_v5 = vsel %vm1216_vm5, 1.0, %v6029_v51  ;;  %vm1160_vm5 = vcmp.eq.s32.totalorder %v4678_v49, %v4721_v38 }
 0x15b   :  { %v2946_v38 = vsel %vm1160_vm5, 1.0, %v6029_v51 }
 0x15c   :  { %863 = vperm.xlu1 %3805, %v662_v4   ;;  %1052 = vperm.xlu0 %3806, %v725_v9   ;;  %v735_v4 = vld [vmem:[%s6019_s2 + $0x368] sm:$0xff]  ;;  %v673_v9 = vld [vmem:[%s6019_s2 + $0x178] sm:$0xff] }
 0x160   :  { %866 = vperm.xlu1 %3805, %v663_v14   ;;  %1055 = vperm.xlu0 %3806, %v726_v15   ;;  %v736_v14 = vld [vmem:[%s6019_s2 + $0x370] sm:$0xff]  ;;  %v4912_v15 = vpop.permute.xlu0 %992 }
 0x164   :  { %869 = vperm.xlu1 %3805, %v664_v16   ;;  %1058 = vperm.xlu0 %3806, %v727_v18   ;;  %v4914_v16 = vpop.permute.xlu1 %995  ;;  %v3292_v18 = vpop.f32.mrb[6].mxu0 }
 0x165   :  { %v741_v18 = vld [vmem:[%s6019_s2 + $0x398] sm:$0xff]  ;;  %vm1218_vm9 = vcmp.eq.s32.totalorder %v4678_v49, %v4914_v16 }
 0x166   :  { %v3004_v16 = vsel %vm1218_vm9, 1.0, %v6029_v51 }
 0x168   :  { %872 = vperm.xlu1 %3805, %v665_v21   ;;  %1061 = vperm.xlu0 %3806, %v728_v22   ;;  %v3330_v21 = vpop.f32.mrb[6].mxu1  ;;  %v674_v22 = vld [vmem:[%s6019_s2 + $0x180] sm:$0xff] }
 0x169   :  { %v679_v21 = vld [vmem:[%s6019_s2 + $0x1a8] sm:$0xff] }
 0x16c   :  { %875 = vperm.xlu1 %3805, %v666_v26   ;;  %1064 = vperm.xlu0 %3806, %v729_v28   ;;  %v737_v26 = vld [vmem:[%s6019_s2 + $0x378] sm:$0xff]  ;;  %v3293_v28 = vpop.f32.mrb[7].mxu0 }
 0x170   :  { %878 = vperm.xlu1 %3805, %v667_v30   ;;  %1067 = vperm.xlu0 %3806, %v730_v31   ;;  %v3331_v30 = vpop.f32.mrb[7].mxu1  ;;  %v4922_v31 = vpop.permute.xlu0 %998 }
 0x171   :  { %v602_v30 = vstv %s2921_s15  ;;  %vm1219_vm11 = vcmp.eq.s32.totalorder %v4678_v49, %v4922_v31 }
 0x174   :  { %881 = vperm.xlu1 %3805, %v668_v35   ;;  %1070 = vperm.xlu0 %3806, %v731_v36   ;;  %v4924_v35 = vpop.permute.xlu1 %1001  ;;  %v675_v36 = vld [vmem:[%s6019_s2 + $0x188] sm:$0xff] }
 0x178   :  { %884 = vperm.xlu1 %3805, %v669_v44   ;;  %1073 = vperm.xlu0 %3806, %v732_v47   ;;  %v738_v44 = vld [vmem:[%s6019_s2 + $0x380] sm:$0xff]  ;;  %v676_v47 = vld [vmem:[%s6019_s2 + $0x190] sm:$0xff] }
 0x17c   :  { %887 = vperm.xlu1 %3805, %v670_v48   ;;  %1076 = vperm.xlu0 %3806, %v733_v52   ;;  %v739_v48 = vld [vmem:[%s6019_s2 + $0x388] sm:$0xff]  ;;  %v4938_v52 = vpop.permute.xlu0 %1004 }
 0x17d   :  { %vm1221_vm15 = vcmp.eq.s32.totalorder %v4678_v49, %v4938_v52 }
 0x180   :  { %890 = vperm.xlu1 %3805, %v671_v0   ;;  %1079 = vperm.xlu0 %3806, %v734_v2   ;;  %v4940_v0 = vpop.permute.xlu1 %1007  ;;  %v677_v2 = vld [vmem:[%s6019_s2 + $0x198] sm:$0xff] }
 0x184   :  { %893 = vperm.xlu1 %3805, %v672_v6   ;;  %1082 = vperm.xlu0 %3806, %v735_v4   ;;  %v740_v6 = vld [vmem:[%s6019_s2 + $0x390] sm:$0xff]  ;;  %v4948_v4 = vpop.permute.xlu0 %1010 }
 0x188   :  { %896 = vperm.xlu1 %3805, %v673_v9   ;;  %1085 = vperm.xlu0 %3806, %v736_v14   ;;  %v4950_v9 = vpop.permute.xlu1 %1013  ;;  %v678_v14 = vld [vmem:[%s6019_s2 + $0x1a0] sm:$0xff] }
 0x18c   :  { %899 = vperm.xlu1 %3805, %v674_v22   ;;  %1088 = vperm.xlu0 %3806, %v737_v26   ;;  %v742_v22 = vld [vmem:[%s6019_s2 + $0x3a0] sm:$0xff]  ;;  %v4964_v26 = vpop.permute.xlu0 %1016  ;;  %v4966_v28 = vpop.permute.xlu1 %1019 }
 0x18d   :  { %6027 = vst [vmem:[#allocation10_spill] sm:$0xff] %v4966_v28 }
 0x190   :  { %902 = vperm.xlu1 %3805, %v675_v36   ;;  %1091 = vperm.xlu0 %3806, %v738_v44   ;;  %v583_v36 = vstv %s582_s16  ;;  %v592_v44 = vstv %s2920_s20 }
 0x194   :  { %905 = vperm.xlu1 %3805, %v676_v47   ;;  %1094 = vperm.xlu0 %3806, %v739_v48   ;;  %v680_v47 = vld [vmem:[%s6019_s2 + $0x1b0] sm:$0xff]  ;;  %v743_v48 = vld [vmem:[%s6019_s2 + $0x3a8] sm:$0xff] }
 0x198   :  { %908 = vperm.xlu1 %3805, %v677_v2   ;;  %1097 = vperm.xlu0 %3806, %v740_v6  }
 0x19c   :  { %911 = vperm.xlu1 %3805, %v678_v14   ;;  %1100 = vperm.xlu0 %3806, %v741_v18  }
 0x1a0   :  { %914 = vperm.xlu1 %3805, %v679_v21   ;;  %1103 = vperm.xlu0 %3806, %v742_v22   ;;  %v593_v21 = vmul.f32 %v592_v44, %v4738_v27  ;;  %v682_v27 = vld [vmem:[%s6019_s2 + $0x1c0] sm:$0xff]  ;;  %v683_v44 = vld [vmem:[%s6019_s2 + $0x1c8] sm:$0xff] }
 0x1a2   :  { %v598_v2 = vpop.permute.xlu1 %597  ;;  %v579_v6 = vpop.permute.xlu0 %578 }
 0x1a3   :  { %v603_v14 = vmul.f32 %v602_v30, %v598_v2  ;;  %v584_v18 = vmul.f32 %v583_v36, %v579_v6  ;;  %v745_v30 = vld [vmem:[%s6019_s2 + $0x3b8] sm:$0xff] }
 0x1a4   :  { %917 = vperm.xlu1 %3805, %v680_v47   ;;  %1106 = vperm.xlu0 %3806, %v743_v48   ;;  %v685_v47 = vld [vmem:[%s6019_s2 + $0x1d8] sm:$0xff]  ;;  %v748_v48 = vld [vmem:[%s6019_s2 + $0x3d0] sm:$0xff] }
 0x1a5   :  { %v587_v22 = vsel %vm586_vm3, %v584_v18, 0.0  ;;  %v606_v28 = vsel %vm605_vm4, %v603_v14, 0.0  ;;  %vm1144_vm3 = vcmp.eq.s32.totalorder %v4678_v49, %v4728_v63  ;;  %vm1208_vm4 = vcmp.eq.s32.totalorder %v4678_v49, %v4846_v25 }
 0x1a6   :  { %v595_v8 = vadd.f32 %v593_v21, %v587_v22  ;;  %v686_v21 = vld [vmem:[%s6019_s2 + $0x1e0] sm:$0xff]  ;;  %v749_v22 = vld [vmem:[%s6019_s2 + $0x3d8] sm:$0xff]  ;;  %v2994_v63 = vsel %vm1208_vm4, 1.0, %v6029_v51  ;;  %vm1152_vm4 = vcmp.eq.s32.totalorder %v4678_v49, %v4713_v39 }
 0x1a7   :  { %v2938_v39 = vsel %vm1152_vm4, 1.0, %v6029_v51  ;;  %vm1223_vm4 = vcmp.eq.s32.totalorder %v4678_v49, %v4948_v4 }
 0x1a8   :  { %v608_v41 = vadd.f32 %v606_v28, %v595_v8  ;;  %920 = vperm.xlu1 %3805, %v681_v50   ;;  %1109 = vperm.xlu0 %3806, %v744_v54   ;;  %v746_v50 = vld [vmem:[%s6019_s2 + $0x3c0] sm:$0xff]  ;;  %v684_v54 = vld [vmem:[%s6019_s2 + $0x1d0] sm:$0xff] }
 0x1aa   :  { %v2922_v36 = vmul.f32 -1.442695, %v608_v41  ;;  %v747_v41 = vld [vmem:[%s6019_s2 + $0x3c8] sm:$0xff] }
 0x1ac   :  { %3809 = vpow2.f32 %v2922_v36  ;;  %923 = vperm.xlu1 %3805, %v682_v27   ;;  %1112 = vperm.xlu0 %3806, %v745_v30   ;;  %v687_v36 = vld [vmem:[%s6019_s2 + $0x1e8] sm:$0xff] }
 0x1b0   :  { %926 = vperm.xlu1 %3805, %v683_v44   ;;  %1115 = vperm.xlu0 %3806, %v746_v50   ;;  %v750_v44 = vld [vmem:[%s6019_s2 + $0x3e0] sm:$0xff] }
 0x1b3   :  { %v5001_v8 = vpop.permute.xlu1 %833  ;;  %v5003_v28 = vpop.permute.xlu0 %1022 }
 0x1b4   :  { %929 = vperm.xlu1 %3805, %v684_v54   ;;  %1118 = vperm.xlu0 %3806, %v747_v41   ;;  %v688_v41 = vld [vmem:[%s6019_s2 + $0x1f0] sm:$0xff]  ;;  %vm1227_vm12 = vcmp.eq.s32.totalorder %v4678_v49, %v5003_v28 }
 0x1b6   :  { %v3810_v2 = vpop.eup %3809 }
 0x1b7   :  { %v618_v6 = vadd.f32 1.0, %v3810_v2  ;;  %v5011_v14 = vpop.permute.xlu1 %836  ;;  %v5013_v18 = vpop.permute.xlu0 %1025 }
 0x1b8   :  { %932 = vperm.xlu1 %3805, %v685_v47   ;;  %1121 = vperm.xlu0 %3806, %v748_v48   ;;  %v751_v47 = vld [vmem:[%s6019_s2 + $0x3e8] sm:$0xff] }
 0x1b9   :  { %3811 = vrcp.f32 %v618_v6 }
 0x1bb   :  { %v5021_v27 = vpop.permute.xlu1 %839  ;;  %v5023_v30 = vpop.permute.xlu0 %1028 }
 0x1bc   :  { %935 = vperm.xlu1 %3805, %v686_v21   ;;  %1124 = vperm.xlu0 %3806, %v749_v22   ;;  %v6028_v21 = vmov 1.0   ;;  %vm1229_vm0 = vcmp.eq.s32.totalorder %v4678_v49, %v5023_v30 }
 0x1bd   :  { %v3015_v30 = vsel %vm1229_vm0, 1.0, %v6029_v51 }
 0x1bf   :  { %v5031_v50 = vpop.permute.xlu1 %842  ;;  %v5033_v54 = vpop.permute.xlu0 %1031 }
 0x1c0   :  { %938 = vperm.xlu1 %3805, %v687_v36   ;;  %1127 = vperm.xlu0 %3806, %v750_v44   ;;  %v689_v36 = vld [vmem:[%s6019_s2 + $0x1f8] sm:$0xff]  ;;  %v752_v44 = vld [vmem:[%s6019_s2 + $0x3f0] sm:$0xff] }
 0x1c3   :  { %v3812_v48 = vpop.eup %3811  ;;  %v5041_v2 = vpop.permute.xlu1 %845 }
 0x1c4   :  { %v5043_v6 = vpop.permute.xlu0 %1034  ;;  %941 = vperm.xlu1 %3805, %v688_v41   ;;  %1130 = vperm.xlu0 %3806, %v751_v47   ;;  %v3787_v22 = vpack.c.bf16 %v6028_v21, %v3812_v48  ;;  %v2925_v48 = vsel %vm1139_vm8, 1.0, %v6029_v51  ;;  %v753_v21 = vld [vmem:[%s6019_s2 + $0x3f8] sm:$0xff]  ;;  %vm1210_vm8 = vcmp.eq.s32.totalorder %v4678_v49, %v4862_v34 }
 0x1c5   :  { %v2996_v34 = vsel %vm1210_vm8, 1.0, %v6029_v51  ;;  %vm1154_vm8 = vcmp.eq.s32.totalorder %v4678_v49, %v4715_v58  ;;  %vm1231_vm5 = vcmp.eq.s32.totalorder %v4678_v49, %v5043_v6 }
 0x1c6   :  { %3789 = vmatprep.subr.msk.bf16.mxu0 %vm3788_vm7, %v3787_v22  ;;  %3793 = vmatprep.subr.msk.bf16.mxu1 %vm3788_vm7, %v3787_v22  ;;  %v2940_v58 = vsel %vm1154_vm8, 1.0, %v6029_v51  ;;  %vm1225_vm8 = vcmp.eq.s32.totalorder %v4678_v49, %v4964_v26  ;;  %v3017_v6 = vsel %vm1231_vm5, 1.0, %v6029_v51 }
 0x1c7   :  { %v5060_v41 = vpop.permute.xlu1 %848  ;;  %3792 = vmatpush3.bf16.msk.msra.mxu0 %vm3788_vm7, %v3787_v22  ;;  %3794 = vmatpush3.bf16.msk.msra.mxu1 %vm3788_vm7, %v3787_v22  ;;  %vm1146_vm7 = vcmp.eq.s32.totalorder %v4678_v49, %v4707_v23 }
 0x1c8   :  { %v5062_v47 = vpop.permute.xlu0 %1037  ;;  %944 = vperm.xlu1 %3805, %v689_v36   ;;  %1133 = vperm.xlu0 %3806, %v752_v44   ;;  %v2928_v44 = vsel %vm1142_vm14, 1.0, %v6029_v51  ;;  %v2932_v23 = vsel %vm1146_vm7, 1.0, %v6029_v51  ;;  %vm1213_vm14 = vcmp.eq.s32.totalorder %v4678_v49, %v4886_v53  ;;  %v2935_v53 = vsel %vm1149_vm13, 1.0, %v6029_v51 }
 0x1c9   :  { %vm1217_vm7 = vcmp.eq.s32.totalorder %v4678_v49, %v4912_v15  ;;  %v2939_v15 = vsel %vm1153_vm6, 1.0, %v6029_v51  ;;  %vm1220_vm13 = vcmp.eq.s32.totalorder %v4678_v49, %v4924_v35  ;;  %vm1224_vm6 = vcmp.eq.s32.totalorder %v4678_v49, %v4950_v9 }
 0x1ca   :  { %3468 = vmatmul.mubr.msk.f32.vlgmr.msra.gmra.mrb[8].mxu0 %vm1522_vm1, %v2925_v48  ;;  %3564 = vmatmul.mubr.msk.f32.vlgmr.msra.gmra.mrb[8].mxu1 %vm1522_vm1, %v2989_v10  ;;  %v2930_v10 = vsel %vm1144_vm3, 1.0, %v6029_v51  ;;  %vm1215_vm3 = vcmp.eq.s32.totalorder %v4678_v49, %v4896_v3  ;;  %v2937_v3 = vsel %vm1151_vm2, 1.0, %v6029_v51  ;;  %v3006_v35 = vsel %vm1220_vm13, 1.0, %v6029_v51 }
 0x1cb   :  { %v5081_v22 = vpop.permute.xlu1 %851  ;;  %3470 = vmatprep.mubr.msk.f32.mxu0 %vm1522_vm1, %v2926_v17  ;;  %3566 = vmatprep.mubr.msk.f32.mxu1 %vm1522_vm1, %v2990_v11  ;;  %v2997_v11 = vsel %vm1211_vm10, 1.0, %v6029_v51  ;;  %vm1155_vm10 = vcmp.eq.s32.totalorder %v4678_v49, %v4766_v42  ;;  %vm1222_vm2 = vcmp.eq.s32.totalorder %v4678_v49, %v4940_v0  ;;  %v3010_v9 = vsel %vm1224_vm6, 1.0, %v6029_v51 }
 0x1cc   :  { %v5083_v36 = vpop.permute.xlu0 %1040  ;;  %1136 = vperm.xlu0 %3806, %v753_v21   ;;  %v2941_v31 = vsel %vm1155_vm10, 1.0, %v6029_v51  ;;  %v3008_v0 = vsel %vm1222_vm2, 1.0, %v6029_v51  ;;  %vm1164_vm13 = vcmp.eq.s32.totalorder %v4678_v49, %v5001_v8  ;;  %vm1166_vm2 = vcmp.eq.s32.totalorder %v4678_v49, %v5021_v27 }
 0x1cd   :  { %vm1168_vm6 = vcmp.eq.s32.totalorder %v4678_v49, %v5041_v2 }
 0x1ce   :  { %3471 = vmatmul.mubr.msk.f32.gmra.mrb[10].mxu0 %vm1522_vm1, %v2927_v33  ;;  %3567 = vmatmul.mubr.msk.f32.gmra.mrb[10].mxu1 %vm1522_vm1, %v2991_v19  ;;  %v2999_v19 = vsel %vm1213_vm14, 1.0, %v6029_v51  ;;  %vm1157_vm14 = vcmp.eq.s32.totalorder %v4678_v49, %v4774_v45 }
 0x1cf   :  { %v5101_v20 = vpop.permute.xlu1 %854  ;;  %3473 = vmatprep.mubr.msk.f32.mxu0 %vm1522_vm1, %v2928_v44  ;;  %3569 = vmatprep.mubr.msk.f32.mxu1 %vm1522_vm1, %v2992_v55  ;;  %v3001_v55 = vsel %vm1215_vm3, 1.0, %v6029_v51  ;;  %v2943_v52 = vsel %vm1157_vm14, 1.0, %v6029_v51  ;;  %vm1159_vm3 = vcmp.eq.s32.totalorder %v4678_v49, %v4788_v61  ;;  %vm1228_vm14 = vcmp.eq.s32.totalorder %v4678_v49, %v5013_v18 }
 0x1d0   :  { %v5103_v48 = vpop.permute.xlu0 %1043  ;;  %v2945_v4 = vsel %vm1159_vm3, 1.0, %v6029_v51  ;;  %v3014_v8 = vsel %vm1228_vm14, 1.0, %v6029_v51  ;;  %vm1230_vm3 = vcmp.eq.s32.totalorder %v4678_v49, %v5033_v54 }
 0x1d1   :  { %v3016_v27 = vsel %vm1230_vm3, 1.0, %v6029_v51 }
 0x1d2   :  { %3474 = vmatmul.mubr.msk.f32.gmra.mrb[12].mxu0 %vm1522_vm1, %v2929_v56  ;;  %3570 = vmatmul.mubr.msk.f32.gmra.mrb[12].mxu1 %vm1522_vm1, %v2993_v24  ;;  %v3003_v24 = vsel %vm1217_vm7, 1.0, %v6029_v51  ;;  %vm1161_vm7 = vcmp.eq.s32.totalorder %v4678_v49, %v4796_v1 }
 0x1d3   :  { %v5121_v25 = vpop.permute.xlu1 %857  ;;  %3476 = vmatprep.mubr.msk.f32.mxu0 %vm1522_vm1, %v2930_v10  ;;  %3572 = vmatprep.mubr.msk.f32.mxu1 %vm1522_vm1, %v2994_v63  ;;  %v3005_v63 = vsel %vm1219_vm11, 1.0, %v6029_v51  ;;  %v2947_v26 = vsel %vm1161_vm7, 1.0, %v6029_v51  ;;  %vm1232_vm7 = vcmp.eq.s32.totalorder %v4678_v49, %v5062_v47 }
 0x1d4   :  { %v5123_v21 = vpop.permute.xlu0 %1046  ;;  %v3018_v2 = vsel %vm1232_vm7, 1.0, %v6029_v51  ;;  %vm1172_vm14 = vcmp.eq.s32.totalorder %v4678_v49, %v5121_v25 }
 0x1d6   :  { %3477 = vmatmul.mubr.msk.f32.gmra.mrb[14].mxu0 %vm1522_vm1, %v2931_v46  ;;  %3573 = vmatmul.mubr.msk.f32.gmra.mrb[14].mxu1 %vm1522_vm1, %v2995_v32  ;;  %v3007_v32 = vsel %vm1221_vm15, 1.0, %v6029_v51  ;;  %vm1165_vm15 = vcmp.eq.s32.totalorder %v4678_v49, %v5011_v14 }
 0x1d7   :  { %v5141_v17 = vpop.permute.xlu1 %860  ;;  %3479 = vmatprep.mubr.msk.f32.mxu0 %vm1522_vm1, %v2932_v23  ;;  %3575 = vmatprep.mubr.msk.f32.mxu1 %vm1522_vm1, %v2996_v34  ;;  %v3009_v34 = vsel %vm1223_vm4, 1.0, %v6029_v51  ;;  %v2951_v14 = vsel %vm1165_vm15, 1.0, %v6029_v51  ;;  %vm1167_vm4 = vcmp.eq.s32.totalorder %v4678_v49, %v5031_v50 }
 0x1d8   :  { %v5143_v40 = vpop.permute.xlu0 %1049  ;;  %v2953_v50 = vsel %vm1167_vm4, 1.0, %v6029_v51  ;;  %vm1173_vm0 = vcmp.eq.s32.totalorder %v4678_v49, %v5141_v17 }
 0x1d9   :  { %vm1236_vm15 = vcmp.eq.s32.totalorder %v4678_v49, %v5143_v40  ;;  %v2959_v17 = vsel %vm1173_vm0, 1.0, %v6029_v51 }
 0x1da   :  { %3480 = vmatmul.mubr.msk.f32.gmra.mrb[16].mxu0 %vm1522_vm1, %v2933_v37  ;;  %3576 = vmatmul.mubr.msk.f32.gmra.mrb[16].mxu1 %vm1522_vm1, %v2997_v11  ;;  %v6030_v37 = vld [vmem:[#allocation8_spill] sm:$0xff]  ;;  %v6031_v11 = vld [vmem:[#allocation10_spill] sm:$0xff]  ;;  %v3022_v25 = vsel %vm1236_vm15, 1.0, %v6029_v51 }
 0x1db   :  { %v5161_v33 = vpop.permute.xlu1 %863  ;;  %3482 = vmatprep.mubr.msk.f32.mxu0 %vm1522_vm1, %v2934_v29  ;;  %3578 = vmatprep.mubr.msk.f32.mxu1 %vm1522_vm1, %v2998_v43  ;;  %vm1162_vm9 = vcmp.eq.s32.totalorder %v4678_v49, %v6030_v37  ;;  %vm1226_vm10 = vcmp.eq.s32.totalorder %v4678_v49, %v6031_v11  ;;  %v3011_v43 = vsel %vm1225_vm8, 1.0, %v6029_v51  ;;  %vm1169_vm8 = vcmp.eq.s32.totalorder %v4678_v49, %v5060_v41 }
 0x1dc   :  { %v5163_v7 = vpop.permute.xlu0 %1052  ;;  %v2955_v41 = vsel %vm1169_vm8, 1.0, %v6029_v51  ;;  %vm1174_vm3 = vcmp.eq.s32.totalorder %v4678_v49, %v5161_v33 }
 0x1de   :  { %3483 = vmatmul.mubr.msk.f32.gmra.mrb[18].mxu0 %vm1522_vm1, %v2935_v53  ;;  %3579 = vmatmul.mubr.msk.f32.gmra.mrb[18].mxu1 %vm1522_vm1, %v2999_v19  ;;  %v6032_v53 = vld [vmem:[#allocation9_spill] sm:$0xff]  ;;  %v2948_v19 = vsel %vm1162_vm9, 1.0, %v6029_v51  ;;  %vm1233_vm9 = vcmp.eq.s32.totalorder %v4678_v49, %v5083_v36 }
 0x1df   :  { %v5181_v44 = vpop.permute.xlu1 %866  ;;  %3485 = vmatprep.mubr.msk.f32.mxu0 %vm1522_vm1, %v2936_v57  ;;  %3581 = vmatprep.mubr.msk.f32.mxu1 %vm1522_vm1, %v3000_v62  ;;  %vm1163_vm11 = vcmp.eq.s32.totalorder %v4678_v49, %v6032_v53  ;;  %v3012_v57 = vsel %vm1226_vm10, 1.0, %v6029_v51  ;;  %vm1170_vm10 = vcmp.eq.s32.totalorder %v4678_v49, %v5081_v22  ;;  %v3019_v36 = vsel %vm1233_vm9, 1.0, %v6029_v51 }
 0x1e0   :  { %v5183_v12 = vpop.permute.xlu0 %1055  ;;  %v2949_v28 = vsel %vm1163_vm11, 1.0, %v6029_v51  ;;  %vm1234_vm11 = vcmp.eq.s32.totalorder %v4678_v49, %v5103_v48  ;;  %vm1175_vm5 = vcmp.eq.s32.totalorder %v4678_v49, %v5181_v44 }
 0x1e1   :  { %v3020_v22 = vsel %vm1234_vm11, 1.0, %v6029_v51  ;;  %vm1238_vm4 = vcmp.eq.s32.totalorder %v4678_v49, %v5183_v12  ;;  %v2961_v44 = vsel %vm1175_vm5, 1.0, %v6029_v51 }
 0x1e2   :  { %3486 = vmatmul.mubr.msk.f32.gmra.mrb[20].mxu0 %vm1522_vm1, %v2937_v3  ;;  %3582 = vmatmul.mubr.msk.f32.gmra.mrb[20].mxu1 %vm1522_vm1, %v3001_v55  ;;  %v3013_v55 = vsel %vm1227_vm12, 1.0, %v6029_v51  ;;  %vm1171_vm12 = vcmp.eq.s32.totalorder %v4678_v49, %v5101_v20  ;;  %v3024_v33 = vsel %vm1238_vm4, 1.0, %v6029_v51 }
 0x1e3   :  { %v5201_v56 = vpop.permute.xlu1 %869  ;;  %3488 = vmatprep.mubr.msk.f32.mxu0 %vm1522_vm1, %v2938_v39  ;;  %3584 = vmatprep.mubr.msk.f32.mxu1 %vm1522_vm1, %v3002_v5  ;;  %v2950_v39 = vsel %vm1164_vm13, 1.0, %v6029_v51  ;;  %vm1235_vm13 = vcmp.eq.s32.totalorder %v4678_v49, %v5123_v21  ;;  %v2957_v20 = vsel %vm1171_vm12, 1.0, %v6029_v51 }
 0x1e4   :  { %v5203_v13 = vpop.permute.xlu0 %1058  ;;  %v3021_v21 = vsel %vm1235_vm13, 1.0, %v6029_v51  ;;  %vm1176_vm7 = vcmp.eq.s32.totalorder %v4678_v49, %v5201_v56 }
 0x1e6   :  { %3489 = vmatmul.mubr.msk.f32.gmra.mrb[22].mxu0 %vm1522_vm1, %v2939_v15  ;;  %3585 = vmatmul.mubr.msk.f32.gmra.mrb[22].mxu1 %vm1522_vm1, %v3003_v24  ;;  %v2952_v15 = vsel %vm1166_vm2, 1.0, %v6029_v51  ;;  %vm1237_vm2 = vcmp.eq.s32.totalorder %v4678_v49, %v5163_v7 }
 0x1e7   :  { %v5221_v10 = vpop.permute.xlu1 %872  ;;  %3491 = vmatprep.mubr.msk.f32.mxu0 %vm1522_vm1, %v2940_v58  ;;  %3587 = vmatprep.mubr.msk.f32.mxu1 %vm1522_vm1, %v3004_v16  ;;  %v2954_v58 = vsel %vm1168_vm6, 1.0, %v6029_v51  ;;  %v3023_v7 = vsel %vm1237_vm2, 1.0, %v6029_v51  ;;  %vm1239_vm6 = vcmp.eq.s32.totalorder %v4678_v49, %v5203_v13 }
 0x1e8   :  { %v5223_v42 = vpop.permute.xlu0 %1061  ;;  %v3025_v13 = vsel %vm1239_vm6, 1.0, %v6029_v51  ;;  %vm1177_vm9 = vcmp.eq.s32.totalorder %v4678_v49, %v5221_v10 }
 0x1e9   :  { %vm1240_vm8 = vcmp.eq.s32.totalorder %v4678_v49, %v5223_v42  ;;  %v2963_v10 = vsel %vm1177_vm9, 1.0, %v6029_v51 }
 0x1ea   :  { %3492 = vmatmul.mubr.msk.f32.gmra.mrb[24].mxu0 %vm1522_vm1, %v2941_v31  ;;  %3588 = vmatmul.mubr.msk.f32.gmra.mrb[24].mxu1 %vm1522_vm1, %v3005_v63  ;;  %v2956_v31 = vsel %vm1170_vm10, 1.0, %v6029_v51  ;;  %v3026_v56 = vsel %vm1240_vm8, 1.0, %v6029_v51 }
 0x1eb   :  { %v5241_v46 = vpop.permute.xlu1 %875  ;;  %3494 = vmatprep.mubr.msk.f32.mxu0 %vm1522_vm1, %v2942_v59  ;;  %3590 = vmatprep.mubr.msk.f32.mxu1 %vm1522_vm1, %v3006_v35  ;;  %v2958_v59 = vsel %vm1172_vm14, 1.0, %v6029_v51 }
 0x1ec   :  { %v5243_v45 = vpop.permute.xlu0 %1064  ;;  %vm1178_vm11 = vcmp.eq.s32.totalorder %v4678_v49, %v5241_v46 }
 0x1ed   :  { %vm1241_vm10 = vcmp.eq.s32.totalorder %v4678_v49, %v5243_v45 }
 0x1ee   :  { %3495 = vmatmul.mubr.msk.f32.gmra.mrb[26].mxu0 %vm1522_vm1, %v2943_v52  ;;  %3591 = vmatmul.mubr.msk.f32.gmra.mrb[26].mxu1 %vm1522_vm1, %v3007_v32  ;;  %v2960_v52 = vsel %vm1174_vm3, 1.0, %v6029_v51  ;;  %v3027_v45 = vsel %vm1241_vm10, 1.0, %v6029_v51 }
 0x1ef   :  { %v5261_v23 = vpop.permute.xlu1 %878  ;;  %3497 = vmatprep.mubr.msk.f32.mxu0 %vm1522_vm1, %v2944_v60  ;;  %3593 = vmatprep.mubr.msk.f32.mxu1 %vm1522_vm1, %v3008_v0  ;;  %v2962_v60 = vsel %vm1176_vm7, 1.0, %v6029_v51 }
 0x1f0   :  { %v5263_v61 = vpop.permute.xlu0 %1067  ;;  %vm1179_vm13 = vcmp.eq.s32.totalorder %v4678_v49, %v5261_v23 }
 0x1f1   :  { %vm1242_vm12 = vcmp.eq.s32.totalorder %v4678_v49, %v5263_v61  ;;  %v2965_v23 = vsel %vm1179_vm13, 1.0, %v6029_v51 }
 0x1f2   :  { %3498 = vmatmul.mubr.msk.f32.gmra.mrb[28].mxu0 %vm1522_vm1, %v2945_v4  ;;  %3594 = vmatmul.mubr.msk.f32.gmra.mrb[28].mxu1 %vm1522_vm1, %v3009_v34  ;;  %v2964_v4 = vsel %vm1178_vm11, 1.0, %v6029_v51  ;;  %v3028_v46 = vsel %vm1242_vm12, 1.0, %v6029_v51 }
 0x1f3   :  { %v5281_v29 = vpop.permute.xlu1 %881  ;;  %3500 = vmatprep.mubr.msk.f32.mxu0 %vm1522_vm1, %v2946_v38  ;;  %3596 = vmatprep.mubr.msk.f32.mxu1 %vm1522_vm1, %v3010_v9 }
 0x1f4   :  { %v5283_v1 = vpop.permute.xlu0 %1070  ;;  %vm1180_vm15 = vcmp.eq.s32.totalorder %v4678_v49, %v5281_v29 }
 0x1f5   :  { %vm1243_vm14 = vcmp.eq.s32.totalorder %v4678_v49, %v5283_v1  ;;  %v2966_v9 = vsel %vm1180_vm15, 1.0, %v6029_v51 }
 0x1f6   :  { %3501 = vmatmul.mubr.msk.f32.gmra.mrb[30].mxu0 %vm1522_vm1, %v2947_v26  ;;  %3597 = vmatmul.mubr.msk.f32.gmra.mrb[30].mxu1 %vm1522_vm1, %v3011_v43  ;;  %v3029_v38 = vsel %vm1243_vm14, 1.0, %v6029_v51 }
 0x1f7   :  { %v5301_v62 = vpop.permute.xlu1 %884  ;;  %3503 = vmatprep.mubr.msk.f32.mxu0 %vm1522_vm1, %v2948_v19  ;;  %3599 = vmatprep.mubr.msk.f32.mxu1 %vm1522_vm1, %v3012_v57 }
 0x1f8   :  { %v5303_v3 = vpop.permute.xlu0 %1073  ;;  %vm1181_vm2 = vcmp.eq.s32.totalorder %v4678_v49, %v5301_v62 }
 0x1f9   :  { %vm1244_vm0 = vcmp.eq.s32.totalorder %v4678_v49, %v5303_v3  ;;  %v2967_v1 = vsel %vm1181_vm2, 1.0, %v6029_v51 }
 0x1fa   :  { %3504 = vmatmul.mubr.msk.f32.gmra.mrb[32].mxu0 %vm1522_vm1, %v2949_v28  ;;  %3600 = vmatmul.mubr.msk.f32.gmra.mrb[32].mxu1 %vm1522_vm1, %v3013_v55  ;;  %v3030_v37 = vsel %vm1244_vm0, 1.0, %v6029_v51 }
 0x1fb   :  { %v5321_v18 = vpop.permute.xlu1 %887  ;;  %3506 = vmatprep.mubr.msk.f32.mxu0 %vm1522_vm1, %v2950_v39  ;;  %3602 = vmatprep.mubr.msk.f32.mxu1 %vm1522_vm1, %v3014_v8 }
 0x1fc   :  { %v5323_v5 = vpop.permute.xlu0 %1076  ;;  %vm1182_vm4 = vcmp.eq.s32.totalorder %v4678_v49, %v5321_v18 }
 0x1fd   :  { %vm1245_vm3 = vcmp.eq.s32.totalorder %v4678_v49, %v5323_v5  ;;  %v2968_v43 = vsel %vm1182_vm4, 1.0, %v6029_v51 }
 0x1fe   :  { %3507 = vmatmul.mubr.msk.f32.gmra.mrb[34].mxu0 %vm1522_vm1, %v2951_v14  ;;  %3603 = vmatmul.mubr.msk.f32.gmra.mrb[34].mxu1 %vm1522_vm1, %v3015_v30  ;;  %v3031_v26 = vsel %vm1245_vm3, 1.0, %v6029_v51 }
 0x1ff   :  { %v5341_v54 = vpop.permute.xlu1 %890  ;;  %3509 = vmatprep.mubr.msk.f32.mxu0 %vm1522_vm1, %v2952_v15  ;;  %3605 = vmatprep.mubr.msk.f32.mxu1 %vm1522_vm1, %v3016_v27 }
 0x200   :  { %v5343_v24 = vpop.permute.xlu0 %1079  ;;  %vm1183_vm6 = vcmp.eq.s32.totalorder %v4678_v49, %v5341_v54 }
 0x201   :  { %vm1246_vm5 = vcmp.eq.s32.totalorder %v4678_v49, %v5343_v24  ;;  %v2969_v62 = vsel %vm1183_vm6, 1.0, %v6029_v51 }
 0x202   :  { %3510 = vmatmul.mubr.msk.f32.gmra.mrb[36].mxu0 %vm1522_vm1, %v2953_v50  ;;  %3606 = vmatmul.mubr.msk.f32.gmra.mrb[36].mxu1 %vm1522_vm1, %v3017_v6  ;;  %v3032_v53 = vsel %vm1246_vm5, 1.0, %v6029_v51 }
 0x203   :  { %v5361_v47 = vpop.permute.xlu1 %893  ;;  %3512 = vmatprep.mubr.msk.f32.mxu0 %vm1522_vm1, %v2954_v58  ;;  %3608 = vmatprep.mubr.msk.f32.mxu1 %vm1522_vm1, %v3018_v2 }
 0x204   :  { %v5363_v16 = vpop.permute.xlu0 %1082  ;;  %vm1184_vm8 = vcmp.eq.s32.totalorder %v4678_v49, %v5361_v47 }
 0x205   :  { %vm1247_vm7 = vcmp.eq.s32.totalorder %v4678_v49, %v5363_v16  ;;  %v2970_v28 = vsel %vm1184_vm8, 1.0, %v6029_v51 }
 0x206   :  { %3513 = vmatmul.mubr.msk.f32.gmra.mrb[38].mxu0 %vm1522_vm1, %v2955_v41  ;;  %3609 = vmatmul.mubr.msk.f32.gmra.mrb[38].mxu1 %vm1522_vm1, %v3019_v36  ;;  %v3033_v3 = vsel %vm1247_vm7, 1.0, %v6029_v51 }
 0x207   :  { %v5381_v48 = vpop.permute.xlu1 %896  ;;  %3515 = vmatprep.mubr.msk.f32.mxu0 %vm1522_vm1, %v2956_v31  ;;  %3611 = vmatprep.mubr.msk.f32.mxu1 %vm1522_vm1, %v3020_v22 }
 0x208   :  { %v5383_v63 = vpop.permute.xlu0 %1085  ;;  %vm1185_vm10 = vcmp.eq.s32.totalorder %v4678_v49, %v5381_v48 }
 0x209   :  { %vm1248_vm9 = vcmp.eq.s32.totalorder %v4678_v49, %v5383_v63  ;;  %v2971_v18 = vsel %vm1185_vm10, 1.0, %v6029_v51 }
 0x20a   :  { %3516 = vmatmul.mubr.msk.f32.gmra.mrb[40].mxu0 %vm1522_vm1, %v2957_v20  ;;  %3612 = vmatmul.mubr.msk.f32.gmra.mrb[40].mxu1 %vm1522_vm1, %v3021_v21  ;;  %v3034_v55 = vsel %vm1248_vm9, 1.0, %v6029_v51 }
 0x20b   :  { %v5401_v40 = vpop.permute.xlu1 %899  ;;  %3518 = vmatprep.mubr.msk.f32.mxu0 %vm1522_vm1, %v2958_v59  ;;  %3614 = vmatprep.mubr.msk.f32.mxu1 %vm1522_vm1, %v3022_v25 }
 0x20c   :  { %v5403_v35 = vpop.permute.xlu0 %1088  ;;  %vm1186_vm12 = vcmp.eq.s32.totalorder %v4678_v49, %v5401_v40 }
 0x20d   :  { %vm1249_vm11 = vcmp.eq.s32.totalorder %v4678_v49, %v5403_v35  ;;  %v2972_v14 = vsel %vm1186_vm12, 1.0, %v6029_v51 }
 0x20e   :  { %3519 = vmatmul.mubr.msk.f32.gmra.mrb[42].mxu0 %vm1522_vm1, %v2959_v17  ;;  %3615 = vmatmul.mubr.msk.f32.gmra.mrb[42].mxu1 %vm1522_vm1, %v3023_v7  ;;  %v3035_v5 = vsel %vm1249_vm11, 1.0, %v6029_v51 }
 0x20f   :  { %v5421_v12 = vpop.permute.xlu1 %902  ;;  %3521 = vmatprep.mubr.msk.f32.mxu0 %vm1522_vm1, %v2960_v52  ;;  %3617 = vmatprep.mubr.msk.f32.mxu1 %vm1522_vm1, %v3024_v33 }
 0x210   :  { %v5423_v32 = vpop.permute.xlu0 %1091  ;;  %vm1187_vm14 = vcmp.eq.s32.totalorder %v4678_v49, %v5421_v12 }
 0x211   :  { %vm1250_vm13 = vcmp.eq.s32.totalorder %v4678_v49, %v5423_v32  ;;  %v2973_v54 = vsel %vm1187_vm14, 1.0, %v6029_v51 }
 0x212   :  { %3522 = vmatmul.mubr.msk.f32.gmra.mrb[44].mxu0 %vm1522_vm1, %v2961_v44  ;;  %3618 = vmatmul.mubr.msk.f32.gmra.mrb[44].mxu1 %vm1522_vm1, %v3025_v13  ;;  %v3036_v30 = vsel %vm1250_vm13, 1.0, %v6029_v51 }
 0x213   :  { %v5441_v42 = vpop.permute.xlu1 %905  ;;  %3524 = vmatprep.mubr.msk.f32.mxu0 %vm1522_vm1, %v2962_v60  ;;  %3620 = vmatprep.mubr.msk.f32.mxu1 %vm1522_vm1, %v3026_v56 }
 0x214   :  { %v5443_v0 = vpop.permute.xlu0 %1094  ;;  %vm1188_vm0 = vcmp.eq.s32.totalorder %v4678_v49, %v5441_v42 }
 0x215   :  { %vm1251_vm15 = vcmp.eq.s32.totalorder %v4678_v49, %v5443_v0  ;;  %v2974_v50 = vsel %vm1188_vm0, 1.0, %v6029_v51 }
 0x216   :  { %3525 = vmatmul.mubr.msk.f32.gmra.mrb[46].mxu0 %vm1522_vm1, %v2963_v10  ;;  %3621 = vmatmul.mubr.msk.f32.gmra.mrb[46].mxu1 %vm1522_vm1, %v3027_v45  ;;  %v3037_v24 = vsel %vm1251_vm15, 1.0, %v6029_v51 }
 0x217   :  { %v5461_v61 = vpop.permute.xlu1 %908  ;;  %3527 = vmatprep.mubr.msk.f32.mxu0 %vm1522_vm1, %v2964_v4  ;;  %3623 = vmatprep.mubr.msk.f32.mxu1 %vm1522_vm1, %v3028_v46 }
 0x218   :  { %v5463_v34 = vpop.permute.xlu0 %1097  ;;  %vm1189_vm3 = vcmp.eq.s32.totalorder %v4678_v49, %v5461_v61 }
 0x219   :  { %vm1252_vm2 = vcmp.eq.s32.totalorder %v4678_v49, %v5463_v34  ;;  %v2975_v47 = vsel %vm1189_vm3, 1.0, %v6029_v51 }
 0x21a   :  { %3528 = vmatmul.mubr.msk.f32.gmra.mrb[48].mxu0 %vm1522_vm1, %v2965_v23  ;;  %3624 = vmatmul.mubr.msk.f32.gmra.mrb[48].mxu1 %vm1522_vm1, %v3029_v38  ;;  %v3038_v6 = vsel %vm1252_vm2, 1.0, %v6029_v51 }
 0x21b   :  { %v5481_v11 = vpop.permute.xlu1 %911  ;;  %3530 = vmatprep.mubr.msk.f32.mxu0 %vm1522_vm1, %v2966_v9  ;;  %3626 = vmatprep.mubr.msk.f32.mxu1 %vm1522_vm1, %v3030_v37 }
 0x21c   :  { %v1101_v29 = vpop.permute.xlu0 %1100  ;;  %vm1190_vm5 = vcmp.eq.s32.totalorder %v4678_v49, %v5481_v11 }
 0x21d   :  { %vm1253_vm4 = vcmp.eq.s32.totalorder %v4678_v49, %v1101_v29  ;;  %v2976_v41 = vsel %vm1190_vm5, 1.0, %v6029_v51 }
 0x21e   :  { %3531 = vmatmul.mubr.msk.f32.gmra.mrb[50].mxu0 %vm1522_vm1, %v2967_v1  ;;  %3627 = vmatmul.mubr.msk.f32.gmra.mrb[50].mxu1 %vm1522_vm1, %v3031_v26  ;;  %v3039_v16 = vsel %vm1253_vm4, 1.0, %v6029_v51 }
 0x21f   :  { %v915_v19 = vpop.permute.xlu1 %914  ;;  %3533 = vmatprep.mubr.msk.f32.mxu0 %vm1522_vm1, %v2968_v43  ;;  %3629 = vmatprep.mubr.msk.f32.mxu1 %vm1522_vm1, %v3032_v53 }
 0x220   :  { %v1104_v57 = vpop.permute.xlu0 %1103  ;;  %vm1191_vm7 = vcmp.eq.s32.totalorder %v4678_v49, %v915_v19 }
 0x221   :  { %vm1254_vm6 = vcmp.eq.s32.totalorder %v4678_v49, %v1104_v57  ;;  %v2977_v48 = vsel %vm1191_vm7, 1.0, %v6029_v51  ;;  %v3813_v57 = vld [vmem:[%s6020_s3 + $0x8] sm:$0xff] }
 0x222   :  { %3534 = vmatmul.mubr.msk.f32.gmra.mrb[52].mxu0 %vm1522_vm1, %v2969_v62  ;;  %3630 = vmatmul.mubr.msk.f32.gmra.mrb[52].mxu1 %vm1522_vm1, %v3033_v3  ;;  %v3040_v36 = vsel %vm1254_vm6, 1.0, %v6029_v51  ;;  %v3814_v3 = vld [vmem:[%s6020_s3 + $0x208] sm:$0xff] }
 0x223   :  { %v918_v39 = vpop.permute.xlu1 %917  ;;  %3536 = vmatprep.mubr.msk.f32.mxu0 %vm1522_vm1, %v2970_v28  ;;  %3632 = vmatprep.mubr.msk.f32.mxu1 %vm1522_vm1, %v3034_v55 }
 0x224   :  { %v1107_v8 = vpop.permute.xlu0 %1106  ;;  %vm1192_vm9 = vcmp.eq.s32.totalorder %v4678_v49, %v918_v39 }
 0x225   :  { %vm1255_vm8 = vcmp.eq.s32.totalorder %v4678_v49, %v1107_v8  ;;  %v2978_v20 = vsel %vm1192_vm9, 1.0, %v6029_v51  ;;  %v3816_v8 = vld [vmem:[%s6020_s3 + $0x200] sm:$0xff] }
 0x226   :  { %3537 = vmatmul.mubr.msk.f32.gmra.mrb[54].mxu0 %vm1522_vm1, %v2971_v18  ;;  %3633 = vmatmul.mubr.msk.f32.gmra.mrb[54].mxu1 %vm1522_vm1, %v3035_v5  ;;  %v3041_v63 = vsel %vm1255_vm8, 1.0, %v6029_v51 }
 0x227   :  { %v921_v15 = vpop.permute.xlu1 %920  ;;  %3539 = vmatprep.mubr.msk.f32.mxu0 %vm1522_vm1, %v2972_v14  ;;  %3635 = vmatprep.mubr.msk.f32.mxu1 %vm1522_vm1, %v3036_v30  ;;  %v3817_v30 = vld [vmem:[%s6020_s3 + $0x18] sm:$0xff] }
 0x228   :  { %v1110_v27 = vpop.permute.xlu0 %1109  ;;  %vm1193_vm11 = vcmp.eq.s32.totalorder %v4678_v49, %v921_v15 }
 0x229   :  { %vm1256_vm10 = vcmp.eq.s32.totalorder %v4678_v49, %v1110_v27  ;;  %v2979_v40 = vsel %vm1193_vm11, 1.0, %v6029_v51  ;;  %v3818_v27 = vld [vmem:[%s6020_s3 + $0x218] sm:$0xff] }
 0x22a   :  { %3540 = vmatmul.mubr.msk.f32.gmra.mrb[56].mxu0 %vm1522_vm1, %v2973_v54  ;;  %3636 = vmatmul.mubr.msk.f32.gmra.mrb[56].mxu1 %vm1522_vm1, %v3037_v24  ;;  %v3042_v21 = vsel %vm1256_vm10, 1.0, %v6029_v51 }
 0x22b   :  { %v924_v58 = vpop.permute.xlu1 %923  ;;  %3542 = vmatprep.mubr.msk.f32.mxu0 %vm1522_vm1, %v2974_v50  ;;  %3638 = vmatprep.mubr.msk.f32.mxu1 %vm1522_vm1, %v3038_v6  ;;  %v3819_v6 = vld [vmem:[%s6020_s3 + $0x10] sm:$0xff] }
 0x22c   :  { %v1113_v2 = vpop.permute.xlu0 %1112  ;;  %vm1194_vm13 = vcmp.eq.s32.totalorder %v4678_v49, %v924_v58 }
 0x22d   :  { %vm1257_vm12 = vcmp.eq.s32.totalorder %v4678_v49, %v1113_v2  ;;  %v2980_v17 = vsel %vm1194_vm13, 1.0, %v6029_v51  ;;  %v3820_v2 = vld [vmem:[%s6020_s3 + $0x210] sm:$0xff] }
 0x22e   :  { %3543 = vmatmul.mubr.msk.f32.gmra.mrb[58].mxu0 %vm1522_vm1, %v2975_v47  ;;  %3639 = vmatmul.mubr.msk.f32.gmra.mrb[58].mxu1 %vm1522_vm1, %v3039_v16  ;;  %v3043_v35 = vsel %vm1257_vm12, 1.0, %v6029_v51 }
 0x22f   :  { %v927_v31 = vpop.permute.xlu1 %926  ;;  %3545 = vmatprep.mubr.msk.f32.mxu0 %vm1522_vm1, %v2976_v41  ;;  %3641 = vmatprep.mubr.msk.f32.mxu1 %vm1522_vm1, %v3040_v36  ;;  %v3821_v36 = vld [vmem:[%s6020_s3 + $0x28] sm:$0xff] }
 0x230   :  { %v1116_v22 = vpop.permute.xlu0 %1115  ;;  %vm1195_vm15 = vcmp.eq.s32.totalorder %v4678_v49, %v927_v31 }
 0x231   :  { %vm1258_vm14 = vcmp.eq.s32.totalorder %v4678_v49, %v1116_v22  ;;  %v2981_v12 = vsel %vm1195_vm15, 1.0, %v6029_v51  ;;  %v3822_v22 = vld [vmem:[%s6020_s3 + $0x228] sm:$0xff] }
 0x232   :  { %3546 = vmatmul.mubr.msk.f32.gmra.mrb[60].mxu0 %vm1522_vm1, %v2977_v48  ;;  %3642 = vmatmul.mubr.msk.f32.gmra.mrb[60].mxu1 %vm1522_vm1, %v3041_v63  ;;  %v3044_v7 = vsel %vm1258_vm14, 1.0, %v6029_v51 }
 0x233   :  { %v930_v59 = vpop.permute.xlu1 %929  ;;  %3548 = vmatprep.mubr.msk.f32.mxu0 %vm1522_vm1, %v2978_v20  ;;  %3644 = vmatprep.mubr.msk.f32.mxu1 %vm1522_vm1, %v3042_v21  ;;  %v3823_v21 = vld [vmem:[%s6020_s3 + $0x20] sm:$0xff] }
 0x234   :  { %v1119_v25 = vpop.permute.xlu0 %1118  ;;  %vm1196_vm2 = vcmp.eq.s32.totalorder %v4678_v49, %v930_v59 }
 0x235   :  { %vm1259_vm0 = vcmp.eq.s32.totalorder %v4678_v49, %v1119_v25  ;;  %v2982_v13 = vsel %vm1196_vm2, 1.0, %v6029_v51  ;;  %v3824_v25 = vld [vmem:[%s6020_s3 + $0x220] sm:$0xff] }
 0x236   :  { %3549 = vmatmul.mubr.msk.f32.gmra.mrb[62].mxu0 %vm1522_vm1, %v2979_v40  ;;  %3645 = vmatmul.mubr.msk.f32.gmra.mrb[62].mxu1 %vm1522_vm1, %v3043_v35  ;;  %v3045_v32 = vsel %vm1259_vm0, 1.0, %v6029_v51 }
 0x237   :  { %v933_v52 = vpop.permute.xlu1 %932  ;;  %3551 = vmatprep.mubr.msk.f32.mxu0 %vm1522_vm1, %v2980_v17  ;;  %3647 = vmatprep.mubr.msk.f32.mxu1 %vm1522_vm1, %v3044_v7  ;;  %v3825_v7 = vld [vmem:[%s6020_s3 + $0x38] sm:$0xff] }
 0x238   :  { %v1122_v33 = vpop.permute.xlu0 %1121  ;;  %vm1197_vm4 = vcmp.eq.s32.totalorder %v4678_v49, %v933_v52 }
 0x239   :  { %vm1260_vm3 = vcmp.eq.s32.totalorder %v4678_v49, %v1122_v33  ;;  %v2983_v42 = vsel %vm1197_vm4, 1.0, %v6029_v51  ;;  %v3826_v33 = vld [vmem:[%s6020_s3 + $0x238] sm:$0xff] }
 0x23a   :  { %v3046_v44 = vsel %vm1260_vm3, 1.0, %v6029_v51  ;;  %3552 = vmatmul.mubr.msk.f32.gmra.mrb[64].mxu0 %vm1522_vm1, %v2981_v12  ;;  %3648 = vmatmul.mubr.msk.f32.gmra.mrb[64].mxu1 %vm1522_vm1, %v3045_v32 }
 0x23b   :  { %v936_v60 = vpop.permute.xlu1 %935  ;;  %3554 = vmatprep.mubr.msk.f32.mxu0 %vm1522_vm1, %v2982_v13  ;;  %3650 = vmatprep.mubr.msk.f32.mxu1 %vm1522_vm1, %v3046_v44  ;;  %v3827_v13 = vld [vmem:[%s6020_s3 + $0x30] sm:$0xff] }
 0x23c   :  { %v1125_v56 = vpop.permute.xlu0 %1124  ;;  %vm1198_vm5 = vcmp.eq.s32.totalorder %v4678_v49, %v936_v60 }
 0x23d   :  { %vm1261_vm6 = vcmp.eq.s32.totalorder %v4678_v49, %v1125_v56  ;;  %v2984_v0 = vsel %vm1198_vm5, 1.0, %v6029_v51  ;;  %v3828_v56 = vld [vmem:[%s6020_s3 + $0x230] sm:$0xff] }
 0x23e   :  { %v3047_v10 = vsel %vm1261_vm6, 1.0, %v6029_v51  ;;  %3555 = vmatmul.mubr.msk.f32.gmra.mrb[66].mxu0 %vm1522_vm1, %v2983_v42 }
 0x23f   :  { %3651 = vmatmul.mubr.msk.f32.gmra.mrb[66].mxu1 %vm1522_vm1, %v3047_v10  ;;  %v939_v45 = vpop.permute.xlu1 %938  ;;  %3557 = vmatprep.mubr.msk.f32.mxu0 %vm1522_vm1, %v2984_v0 }
 0x240   :  { %v1128_v4 = vpop.permute.xlu0 %1127  ;;  %vm1199_vm7 = vcmp.eq.s32.totalorder %v4678_v49, %v939_v45  ;;  %v3829_v45 = vld [vmem:[%s6020_s3 + $0x48] sm:$0xff] }
 0x241   :  { %vm1262_vm8 = vcmp.eq.s32.totalorder %v4678_v49, %v1128_v4  ;;  %v2985_v46 = vsel %vm1199_vm7, 1.0, %v6029_v51 }
 0x242   :  { %v3048_v61 = vsel %vm1262_vm8, 1.0, %v6029_v51  ;;  %3558 = vmatmul.mubr.msk.f32.gmra.mrb[68].mxu0 %vm1522_vm1, %v2985_v46  ;;  %v3830_v46 = vld [vmem:[%s6020_s3 + $0x248] sm:$0xff] }
 0x243   :  { %3653 = vmatprep.mubr.msk.f32.mxu1 %vm1522_vm1, %v3048_v61  ;;  %v942_v34 = vpop.permute.xlu1 %941 }
 0x244   :  { %v1131_v23 = vpop.permute.xlu0 %1130  ;;  %vm1200_vm9 = vcmp.eq.s32.totalorder %v4678_v49, %v942_v34 }
 0x245   :  { %vm1263_vm10 = vcmp.eq.s32.totalorder %v4678_v49, %v1131_v23  ;;  %v2986_v38 = vsel %vm1200_vm9, 1.0, %v6029_v51 }
 0x246   :  { %v3049_v9 = vsel %vm1263_vm10, 1.0, %v6029_v51  ;;  %3560 = vmatprep.mubr.msk.f32.mxu0 %vm1522_vm1, %v2986_v38  ;;  %v3831_v38 = vld [vmem:[%s6020_s3 + $0x40] sm:$0xff] }
 0x247   :  { %3654 = vmatmul.mubr.msk.f32.gmra.mrb[68].mxu1 %vm1522_vm1, %v3049_v9  ;;  %v945_v37 = vpop.permute.xlu1 %944 }
 0x248   :  { %v1134_v11 = vpop.permute.xlu0 %1133  ;;  %vm1201_vm11 = vcmp.eq.s32.totalorder %v4678_v49, %v945_v37  ;;  %v3832_v37 = vld [vmem:[%s6020_s3 + $0x240] sm:$0xff] }
 0x249   :  { %vm1264_vm12 = vcmp.eq.s32.totalorder %v4678_v49, %v1134_v11  ;;  %v2987_v29 = vsel %vm1201_vm11, 1.0, %v6029_v51 }
 0x24a   :  { %v3050_v1 = vsel %vm1264_vm12, 1.0, %v6029_v51  ;;  %3561 = vmatmul.mubr.msk.f32.gmra.mrb[70].mxu0 %vm1522_vm1, %v2987_v29 }
 0x24b   :  { %3656 = vmatprep.mubr.msk.f32.mxu1 %vm1522_vm1, %v3050_v1 }
 0x24c   :  { %v1137_v26 = vpop.permute.xlu0 %1136 }
 0x24d   :  { %vm1265_vm13 = vcmp.eq.s32.totalorder %v4678_v49, %v1137_v26  ;;  %v3815_v49 = vld [vmem:[%s6020_s3] sm:$0xff]  ;;  %v3833_v26 = vld [vmem:[%s6020_s3 + $0x58] sm:$0xff] }
 0x24e   :  { %v3051_v43 = vsel %vm1265_vm13, 1.0, %v6029_v51 }
 0x24f   :  { %3657 = vmatmul.mubr.msk.f32.gmra.mrb[70].mxu1 %vm1522_vm1, %v3051_v43 }
 0x29d   :  { %v3469_v53 = vpop.f32.mrb[8].mxu0  ;;  %v3565_v19 = vpop.f32.mrb[8].mxu1 }
 0x29e   :  { %v2616_v62 = vmul.f32 %v3813_v57, %v3469_v53  ;;  %v2680_v28 = vmul.f32 %v3814_v3, %v3565_v19  ;;  %v1976_v55 = vpop.f32.mrb[9].mxu0  ;;  %v2296_v39 = vpop.f32.mrb[9].mxu1  ;;  %v3834_v53 = vld [vmem:[%s6020_s3 + $0x258] sm:$0xff]  ;;  %v3835_v3 = vld [vmem:[%s6020_s3 + $0x50] sm:$0xff] }
 0x29f   :  { %v2615_v51 = vmul.f32 %v3815_v49, %v1976_v55  ;;  %v2679_v18 = vmul.f32 %v3816_v8, %v2296_v39  ;;  %v3836_v55 = vld [vmem:[%s6020_s3 + $0x250] sm:$0xff]  ;;  %v3837_v8 = vld [vmem:[%s6020_s3 + $0x68] sm:$0xff] }
 0x2a0   :  { %2744 = vst [vmem:[#allocation5 + $0x8] sm:$0xff] %v2616_v62  ;;  %2808 = vst [vmem:[#allocation5 + $0x208] sm:$0xff] %v2680_v28 }
 0x2a1   :  { %2743 = vst [vmem:[#allocation5] sm:$0xff] %v2615_v51  ;;  %2807 = vst [vmem:[#allocation5 + $0x200] sm:$0xff] %v2679_v18  ;;  %v3472_v5 = vpop.f32.mrb[10].mxu0  ;;  %v3568_v14 = vpop.f32.mrb[10].mxu1 }
 0x2a2   :  { %v2618_v15 = vmul.f32 %v3817_v30, %v3472_v5  ;;  %v2682_v54 = vmul.f32 %v3818_v27, %v3568_v14  ;;  %v1986_v24 = vpop.f32.mrb[11].mxu0  ;;  %v2306_v50 = vpop.f32.mrb[11].mxu1  ;;  %v3838_v5 = vld [vmem:[%s6020_s3 + $0x268] sm:$0xff]  ;;  %v3839_v27 = vld [vmem:[%s6020_s3 + $0x60] sm:$0xff] }
 0x2a3   :  { %v2617_v58 = vmul.f32 %v3819_v6, %v1986_v24  ;;  %v2681_v47 = vmul.f32 %v3820_v2, %v2306_v50  ;;  %v3840_v24 = vld [vmem:[%s6020_s3 + $0x260] sm:$0xff]  ;;  %v3841_v2 = vld [vmem:[%s6020_s3 + $0x78] sm:$0xff] }
 0x2a4   :  { %2746 = vst [vmem:[#allocation5 + $0x18] sm:$0xff] %v2618_v15  ;;  %2810 = vst [vmem:[#allocation5 + $0x218] sm:$0xff] %v2682_v54 }
 0x2a5   :  { %2745 = vst [vmem:[#allocation5 + $0x10] sm:$0xff] %v2617_v58  ;;  %2809 = vst [vmem:[#allocation5 + $0x210] sm:$0xff] %v2681_v47  ;;  %v3475_v16 = vpop.f32.mrb[12].mxu0  ;;  %v3571_v41 = vpop.f32.mrb[12].mxu1 }
 0x2a6   :  { %v2620_v31 = vmul.f32 %v3821_v36, %v3475_v16  ;;  %v2684_v48 = vmul.f32 %v3822_v22, %v3571_v41  ;;  %v1996_v63 = vpop.f32.mrb[13].mxu0  ;;  %v2316_v20 = vpop.f32.mrb[13].mxu1  ;;  %v3842_v16 = vld [vmem:[%s6020_s3 + $0x278] sm:$0xff]  ;;  %v3843_v22 = vld [vmem:[%s6020_s3 + $0x70] sm:$0xff] }
 0x2a7   :  { %v2619_v59 = vmul.f32 %v3823_v21, %v1996_v63  ;;  %v2683_v40 = vmul.f32 %v3824_v25, %v2316_v20  ;;  %v3844_v63 = vld [vmem:[%s6020_s3 + $0x270] sm:$0xff]  ;;  %v3845_v25 = vld [vmem:[%s6020_s3 + $0x88] sm:$0xff] }
 0x2a8   :  { %2748 = vst [vmem:[#allocation5 + $0x28] sm:$0xff] %v2620_v31  ;;  %2812 = vst [vmem:[#allocation5 + $0x228] sm:$0xff] %v2684_v48 }
 0x2a9   :  { %2747 = vst [vmem:[#allocation5 + $0x20] sm:$0xff] %v2619_v59  ;;  %2811 = vst [vmem:[#allocation5 + $0x220] sm:$0xff] %v2683_v40  ;;  %v3478_v35 = vpop.f32.mrb[14].mxu0  ;;  %v3574_v17 = vpop.f32.mrb[14].mxu1 }
 0x2aa   :  { %v2622_v52 = vmul.f32 %v3825_v7, %v3478_v35  ;;  %v2686_v12 = vmul.f32 %v3826_v33, %v3574_v17  ;;  %v2006_v32 = vpop.f32.mrb[15].mxu0  ;;  %v2326_v44 = vpop.f32.mrb[15].mxu1  ;;  %v3846_v35 = vld [vmem:[%s6020_s3 + $0x288] sm:$0xff]  ;;  %v3847_v33 = vld [vmem:[%s6020_s3 + $0x80] sm:$0xff] }
 0x2ab   :  { %v2621_v60 = vmul.f32 %v3827_v13, %v2006_v32  ;;  %v2685_v42 = vmul.f32 %v3828_v56, %v2326_v44  ;;  %v3848_v32 = vld [vmem:[%s6020_s3 + $0x280] sm:$0xff]  ;;  %v3849_v56 = vld [vmem:[%s6020_s3 + $0x98] sm:$0xff] }
 0x2ac   :  { %2750 = vst [vmem:[#allocation5 + $0x38] sm:$0xff] %v2622_v52  ;;  %2814 = vst [vmem:[#allocation5 + $0x238] sm:$0xff] %v2686_v12 }
 0x2ad   :  { %2749 = vst [vmem:[#allocation5 + $0x30] sm:$0xff] %v2621_v60  ;;  %2813 = vst [vmem:[#allocation5 + $0x230] sm:$0xff] %v2685_v42  ;;  %v3481_v0 = vpop.f32.mrb[16].mxu0  ;;  %v3577_v10 = vpop.f32.mrb[16].mxu1 }
 0x2ae   :  { %v2624_v4 = vmul.f32 %v3829_v45, %v3481_v0  ;;  %v2688_v61 = vmul.f32 %v3830_v46, %v3577_v10  ;;  %v2016_v34 = vpop.f32.mrb[17].mxu0  ;;  %v2336_v23 = vpop.f32.mrb[17].mxu1  ;;  %v3850_v0 = vld [vmem:[%s6020_s3 + $0x298] sm:$0xff]  ;;  %v3851_v46 = vld [vmem:[%s6020_s3 + $0x90] sm:$0xff] }
 0x2af   :  { %v2623_v9 = vmul.f32 %v3831_v38, %v2016_v34  ;;  %v2687_v11 = vmul.f32 %v3832_v37, %v2336_v23  ;;  %v3852_v34 = vld [vmem:[%s6020_s3 + $0x290] sm:$0xff]  ;;  %v3853_v37 = vld [vmem:[%s6020_s3 + $0xa8] sm:$0xff] }
 0x2b0   :  { %2752 = vst [vmem:[#allocation5 + $0x48] sm:$0xff] %v2624_v4  ;;  %2816 = vst [vmem:[#allocation5 + $0x248] sm:$0xff] %v2688_v61 }
 0x2b1   :  { %2751 = vst [vmem:[#allocation5 + $0x40] sm:$0xff] %v2623_v9  ;;  %2815 = vst [vmem:[#allocation5 + $0x240] sm:$0xff] %v2687_v11  ;;  %v3484_v29 = vpop.f32.mrb[18].mxu0  ;;  %v3580_v1 = vpop.f32.mrb[18].mxu1 }
 0x2b2   :  { %v2626_v43 = vmul.f32 %v3833_v26, %v3484_v29  ;;  %v2690_v19 = vmul.f32 %v3834_v53, %v3580_v1  ;;  %v2026_v57 = vpop.f32.mrb[19].mxu0  ;;  %v2346_v62 = vpop.f32.mrb[19].mxu1  ;;  %v3854_v29 = vld [vmem:[%s6020_s3 + $0x2a8] sm:$0xff]  ;;  %v3855_v53 = vld [vmem:[%s6020_s3 + $0xa0] sm:$0xff] }
 0x2b3   :  { %v2625_v28 = vmul.f32 %v3835_v3, %v2026_v57  ;;  %v2689_v39 = vmul.f32 %v3836_v55, %v2346_v62  ;;  %v3856_v57 = vld [vmem:[%s6020_s3 + $0x2a0] sm:$0xff]  ;;  %v3857_v55 = vld [vmem:[%s6020_s3 + $0xb8] sm:$0xff] }
 0x2b4   :  { %2754 = vst [vmem:[#allocation5 + $0x58] sm:$0xff] %v2626_v43  ;;  %2818 = vst [vmem:[#allocation5 + $0x258] sm:$0xff] %v2690_v19 }
 0x2b5   :  { %2753 = vst [vmem:[#allocation5 + $0x50] sm:$0xff] %v2625_v28  ;;  %2817 = vst [vmem:[#allocation5 + $0x250] sm:$0xff] %v2689_v39  ;;  %v3487_v49 = vpop.f32.mrb[20].mxu0  ;;  %v3583_v51 = vpop.f32.mrb[20].mxu1 }
 0x2b6   :  { %v2628_v18 = vmul.f32 %v3837_v8, %v3487_v49  ;;  %v2692_v14 = vmul.f32 %v3838_v5, %v3583_v51  ;;  %v2036_v30 = vpop.f32.mrb[21].mxu0  ;;  %v2356_v15 = vpop.f32.mrb[21].mxu1  ;;  %v3858_v49 = vld [vmem:[%s6020_s3 + $0x2b8] sm:$0xff]  ;;  %v3859_v5 = vld [vmem:[%s6020_s3 + $0xb0] sm:$0xff] }
 0x2b7   :  { %v2627_v54 = vmul.f32 %v3839_v27, %v2036_v30  ;;  %v2691_v50 = vmul.f32 %v3840_v24, %v2356_v15  ;;  %v3860_v30 = vld [vmem:[%s6020_s3 + $0x2b0] sm:$0xff]  ;;  %v3861_v24 = vld [vmem:[%s6020_s3 + $0xc8] sm:$0xff] }
 0x2b8   :  { %2756 = vst [vmem:[#allocation5 + $0x68] sm:$0xff] %v2628_v18  ;;  %2820 = vst [vmem:[#allocation5 + $0x268] sm:$0xff] %v2692_v14 }
 0x2b9   :  { %2755 = vst [vmem:[#allocation5 + $0x60] sm:$0xff] %v2627_v54  ;;  %2819 = vst [vmem:[#allocation5 + $0x260] sm:$0xff] %v2691_v50  ;;  %v3490_v6 = vpop.f32.mrb[22].mxu0  ;;  %v3586_v58 = vpop.f32.mrb[22].mxu1 }
 0x2ba   :  { %v2630_v47 = vmul.f32 %v3841_v2, %v3490_v6  ;;  %v2694_v41 = vmul.f32 %v3842_v16, %v3586_v58  ;;  %v2046_v36 = vpop.f32.mrb[23].mxu0  ;;  %v2366_v31 = vpop.f32.mrb[23].mxu1  ;;  %v3862_v6 = vld [vmem:[%s6020_s3 + $0x2c8] sm:$0xff]  ;;  %v3863_v16 = vld [vmem:[%s6020_s3 + $0xc0] sm:$0xff] }
 0x2bb   :  { %v2629_v48 = vmul.f32 %v3843_v22, %v2046_v36  ;;  %v2693_v20 = vmul.f32 %v3844_v63, %v2366_v31  ;;  %v3864_v36 = vld [vmem:[%s6020_s3 + $0x2c0] sm:$0xff]  ;;  %v3865_v63 = vld [vmem:[%s6020_s3 + $0xd8] sm:$0xff] }
 0x2bc   :  { %2758 = vst [vmem:[#allocation5 + $0x78] sm:$0xff] %v2630_v47  ;;  %2822 = vst [vmem:[#allocation5 + $0x278] sm:$0xff] %v2694_v41 }
 0x2bd   :  { %2757 = vst [vmem:[#allocation5 + $0x70] sm:$0xff] %v2629_v48  ;;  %2821 = vst [vmem:[#allocation5 + $0x270] sm:$0xff] %v2693_v20  ;;  %v3493_v21 = vpop.f32.mrb[24].mxu0  ;;  %v3589_v59 = vpop.f32.mrb[24].mxu1 }
 0x2be   :  { %v2632_v40 = vmul.f32 %v3845_v25, %v3493_v21  ;;  %v2696_v17 = vmul.f32 %v3846_v35, %v3589_v59  ;;  %v2056_v7 = vpop.f32.mrb[25].mxu0  ;;  %v2376_v52 = vpop.f32.mrb[25].mxu1  ;;  %v3866_v21 = vld [vmem:[%s6020_s3 + $0x2d8] sm:$0xff]  ;;  %v3867_v35 = vld [vmem:[%s6020_s3 + $0xd0] sm:$0xff] }
 0x2bf   :  { %v2631_v12 = vmul.f32 %v3847_v33, %v2056_v7  ;;  %v2695_v44 = vmul.f32 %v3848_v32, %v2376_v52  ;;  %v3868_v7 = vld [vmem:[%s6020_s3 + $0x2d0] sm:$0xff]  ;;  %v3869_v32 = vld [vmem:[%s6020_s3 + $0xe8] sm:$0xff] }
 0x2c0   :  { %2760 = vst [vmem:[#allocation5 + $0x88] sm:$0xff] %v2632_v40  ;;  %2824 = vst [vmem:[#allocation5 + $0x288] sm:$0xff] %v2696_v17 }
 0x2c1   :  { %2759 = vst [vmem:[#allocation5 + $0x80] sm:$0xff] %v2631_v12  ;;  %2823 = vst [vmem:[#allocation5 + $0x280] sm:$0xff] %v2695_v44  ;;  %v3496_v13 = vpop.f32.mrb[26].mxu0  ;;  %v3592_v60 = vpop.f32.mrb[26].mxu1 }
 0x2c2   :  { %v2634_v42 = vmul.f32 %v3849_v56, %v3496_v13  ;;  %v2698_v10 = vmul.f32 %v3850_v0, %v3592_v60  ;;  %v2066_v45 = vpop.f32.mrb[27].mxu0  ;;  %v2386_v4 = vpop.f32.mrb[27].mxu1  ;;  %v3870_v13 = vld [vmem:[%s6020_s3 + $0x2e8] sm:$0xff]  ;;  %v3871_v0 = vld [vmem:[%s6020_s3 + $0xe0] sm:$0xff] }
 0x2c3   :  { %v2633_v61 = vmul.f32 %v3851_v46, %v2066_v45  ;;  %v2697_v23 = vmul.f32 %v3852_v34, %v2386_v4  ;;  %v3872_v45 = vld [vmem:[%s6020_s3 + $0x2e0] sm:$0xff]  ;;  %v3873_v34 = vld [vmem:[%s6020_s3 + $0xf8] sm:$0xff] }
 0x2c4   :  { %2762 = vst [vmem:[#allocation5 + $0x98] sm:$0xff] %v2634_v42  ;;  %2826 = vst [vmem:[#allocation5 + $0x298] sm:$0xff] %v2698_v10 }
 0x2c5   :  { %2761 = vst [vmem:[#allocation5 + $0x90] sm:$0xff] %v2633_v61  ;;  %2825 = vst [vmem:[#allocation5 + $0x290] sm:$0xff] %v2697_v23  ;;  %v3499_v38 = vpop.f32.mrb[28].mxu0  ;;  %v3595_v9 = vpop.f32.mrb[28].mxu1 }
 0x2c6   :  { %v2636_v11 = vmul.f32 %v3853_v37, %v3499_v38  ;;  %v2700_v1 = vmul.f32 %v3854_v29, %v3595_v9  ;;  %v2076_v26 = vpop.f32.mrb[29].mxu0  ;;  %v2396_v43 = vpop.f32.mrb[29].mxu1  ;;  %v3874_v38 = vld [vmem:[%s6020_s3 + $0x2f8] sm:$0xff]  ;;  %v3875_v29 = vld [vmem:[%s6020_s3 + $0xf0] sm:$0xff] }
 0x2c7   :  { %v2635_v19 = vmul.f32 %v3855_v53, %v2076_v26  ;;  %v2699_v62 = vmul.f32 %v3856_v57, %v2396_v43  ;;  %v3876_v26 = vld [vmem:[%s6020_s3 + $0x2f0] sm:$0xff]  ;;  %v3877_v57 = vld [vmem:[%s6020_s3 + $0x108] sm:$0xff] }
 0x2c8   :  { %2764 = vst [vmem:[#allocation5 + $0xa8] sm:$0xff] %v2636_v11  ;;  %2828 = vst [vmem:[#allocation5 + $0x2a8] sm:$0xff] %v2700_v1 }
 0x2c9   :  { %2763 = vst [vmem:[#allocation5 + $0xa0] sm:$0xff] %v2635_v19  ;;  %2827 = vst [vmem:[#allocation5 + $0x2a0] sm:$0xff] %v2699_v62  ;;  %v3502_v3 = vpop.f32.mrb[30].mxu0  ;;  %v3598_v28 = vpop.f32.mrb[30].mxu1 }
 0x2ca   :  { %v2638_v39 = vmul.f32 %v3857_v55, %v3502_v3  ;;  %v2702_v51 = vmul.f32 %v3858_v49, %v3598_v28  ;;  %v2086_v8 = vpop.f32.mrb[31].mxu0  ;;  %v2406_v18 = vpop.f32.mrb[31].mxu1  ;;  %v3878_v3 = vld [vmem:[%s6020_s3 + $0x308] sm:$0xff]  ;;  %v3879_v49 = vld [vmem:[%s6020_s3 + $0x100] sm:$0xff] }
 0x2cb   :  { %v2637_v14 = vmul.f32 %v3859_v5, %v2086_v8  ;;  %v2701_v15 = vmul.f32 %v3860_v30, %v2406_v18  ;;  %v3880_v8 = vld [vmem:[%s6020_s3 + $0x300] sm:$0xff]  ;;  %v3881_v30 = vld [vmem:[%s6020_s3 + $0x118] sm:$0xff] }
 0x2cc   :  { %2766 = vst [vmem:[#allocation5 + $0xb8] sm:$0xff] %v2638_v39  ;;  %2830 = vst [vmem:[#allocation5 + $0x2b8] sm:$0xff] %v2702_v51 }
 0x2cd   :  { %2765 = vst [vmem:[#allocation5 + $0xb0] sm:$0xff] %v2637_v14  ;;  %2829 = vst [vmem:[#allocation5 + $0x2b0] sm:$0xff] %v2701_v15  ;;  %v3505_v27 = vpop.f32.mrb[32].mxu0  ;;  %v3601_v54 = vpop.f32.mrb[32].mxu1 }
 0x2ce   :  { %v2640_v50 = vmul.f32 %v3861_v24, %v3505_v27  ;;  %v2704_v58 = vmul.f32 %v3862_v6, %v3601_v54  ;;  %v2096_v2 = vpop.f32.mrb[33].mxu0  ;;  %v2416_v47 = vpop.f32.mrb[33].mxu1  ;;  %v3882_v27 = vld [vmem:[%s6020_s3 + $0x318] sm:$0xff]  ;;  %v3883_v6 = vld [vmem:[%s6020_s3 + $0x110] sm:$0xff] }
 0x2cf   :  { %v2639_v41 = vmul.f32 %v3863_v16, %v2096_v2  ;;  %v2703_v31 = vmul.f32 %v3864_v36, %v2416_v47  ;;  %v3884_v2 = vld [vmem:[%s6020_s3 + $0x310] sm:$0xff]  ;;  %v3885_v36 = vld [vmem:[%s6020_s3 + $0x128] sm:$0xff] }
 0x2d0   :  { %2768 = vst [vmem:[#allocation5 + $0xc8] sm:$0xff] %v2640_v50  ;;  %2832 = vst [vmem:[#allocation5 + $0x2c8] sm:$0xff] %v2704_v58 }
 0x2d1   :  { %2767 = vst [vmem:[#allocation5 + $0xc0] sm:$0xff] %v2639_v41  ;;  %2831 = vst [vmem:[#allocation5 + $0x2c0] sm:$0xff] %v2703_v31  ;;  %v3508_v22 = vpop.f32.mrb[34].mxu0  ;;  %v3604_v48 = vpop.f32.mrb[34].mxu1 }
 0x2d2   :  { %v2642_v20 = vmul.f32 %v3865_v63, %v3508_v22  ;;  %v2706_v59 = vmul.f32 %v3866_v21, %v3604_v48  ;;  %v2106_v25 = vpop.f32.mrb[35].mxu0  ;;  %v2426_v40 = vpop.f32.mrb[35].mxu1  ;;  %v3886_v22 = vld [vmem:[%s6020_s3 + $0x328] sm:$0xff]  ;;  %v3887_v21 = vld [vmem:[%s6020_s3 + $0x120] sm:$0xff] }
 0x2d3   :  { %v2641_v17 = vmul.f32 %v3867_v35, %v2106_v25  ;;  %v2705_v52 = vmul.f32 %v3868_v7, %v2426_v40  ;;  %v3888_v25 = vld [vmem:[%s6020_s3 + $0x320] sm:$0xff]  ;;  %v3889_v7 = vld [vmem:[%s6020_s3 + $0x138] sm:$0xff] }
 0x2d4   :  { %2770 = vst [vmem:[#allocation5 + $0xd8] sm:$0xff] %v2642_v20  ;;  %2834 = vst [vmem:[#allocation5 + $0x2d8] sm:$0xff] %v2706_v59 }
 0x2d5   :  { %2769 = vst [vmem:[#allocation5 + $0xd0] sm:$0xff] %v2641_v17  ;;  %2833 = vst [vmem:[#allocation5 + $0x2d0] sm:$0xff] %v2705_v52  ;;  %v3511_v33 = vpop.f32.mrb[36].mxu0  ;;  %v3607_v12 = vpop.f32.mrb[36].mxu1 }
 0x2d6   :  { %v2644_v44 = vmul.f32 %v3869_v32, %v3511_v33  ;;  %v2708_v60 = vmul.f32 %v3870_v13, %v3607_v12  ;;  %v2116_v56 = vpop.f32.mrb[37].mxu0  ;;  %v2436_v42 = vpop.f32.mrb[37].mxu1  ;;  %v3890_v33 = vld [vmem:[%s6020_s3 + $0x338] sm:$0xff]  ;;  %v3891_v13 = vld [vmem:[%s6020_s3 + $0x130] sm:$0xff] }
 0x2d7   :  { %v2643_v10 = vmul.f32 %v3871_v0, %v2116_v56  ;;  %v2707_v4 = vmul.f32 %v3872_v45, %v2436_v42  ;;  %v3892_v56 = vld [vmem:[%s6020_s3 + $0x330] sm:$0xff]  ;;  %v3893_v45 = vld [vmem:[%s6020_s3 + $0x148] sm:$0xff] }
 0x2d8   :  { %2772 = vst [vmem:[#allocation5 + $0xe8] sm:$0xff] %v2644_v44  ;;  %2836 = vst [vmem:[#allocation5 + $0x2e8] sm:$0xff] %v2708_v60 }
 0x2d9   :  { %2771 = vst [vmem:[#allocation5 + $0xe0] sm:$0xff] %v2643_v10  ;;  %2835 = vst [vmem:[#allocation5 + $0x2e0] sm:$0xff] %v2707_v4  ;;  %v3514_v46 = vpop.f32.mrb[38].mxu0  ;;  %v3610_v61 = vpop.f32.mrb[38].mxu1 }
 0x2da   :  { %v2646_v23 = vmul.f32 %v3873_v34, %v3514_v46  ;;  %v2710_v9 = vmul.f32 %v3874_v38, %v3610_v61  ;;  %v2126_v37 = vpop.f32.mrb[39].mxu0  ;;  %v2446_v11 = vpop.f32.mrb[39].mxu1  ;;  %v3894_v46 = vld [vmem:[%s6020_s3 + $0x348] sm:$0xff]  ;;  %v3895_v38 = vld [vmem:[%s6020_s3 + $0x140] sm:$0xff] }
 0x2db   :  { %v2645_v1 = vmul.f32 %v3875_v29, %v2126_v37  ;;  %v2709_v43 = vmul.f32 %v3876_v26, %v2446_v11  ;;  %v3896_v37 = vld [vmem:[%s6020_s3 + $0x340] sm:$0xff]  ;;  %v3897_v26 = vld [vmem:[%s6020_s3 + $0x158] sm:$0xff] }
 0x2dc   :  { %2774 = vst [vmem:[#allocation5 + $0xf8] sm:$0xff] %v2646_v23  ;;  %2838 = vst [vmem:[#allocation5 + $0x2f8] sm:$0xff] %v2710_v9 }
 0x2dd   :  { %2773 = vst [vmem:[#allocation5 + $0xf0] sm:$0xff] %v2645_v1  ;;  %2837 = vst [vmem:[#allocation5 + $0x2f0] sm:$0xff] %v2709_v43  ;;  %v3517_v53 = vpop.f32.mrb[40].mxu0  ;;  %v3613_v19 = vpop.f32.mrb[40].mxu1 }
 0x2de   :  { %v2648_v62 = vmul.f32 %v3877_v57, %v3517_v53  ;;  %v2712_v28 = vmul.f32 %v3878_v3, %v3613_v19  ;;  %v2136_v55 = vpop.f32.mrb[41].mxu0  ;;  %v2456_v39 = vpop.f32.mrb[41].mxu1  ;;  %v3898_v53 = vld [vmem:[%s6020_s3 + $0x358] sm:$0xff]  ;;  %v3899_v3 = vld [vmem:[%s6020_s3 + $0x150] sm:$0xff] }
 0x2df   :  { %v2647_v51 = vmul.f32 %v3879_v49, %v2136_v55  ;;  %v2711_v18 = vmul.f32 %v3880_v8, %v2456_v39  ;;  %v3900_v55 = vld [vmem:[%s6020_s3 + $0x350] sm:$0xff]  ;;  %v3901_v8 = vld [vmem:[%s6020_s3 + $0x168] sm:$0xff] }
 0x2e0   :  { %2776 = vst [vmem:[#allocation5 + $0x108] sm:$0xff] %v2648_v62  ;;  %2840 = vst [vmem:[#allocation5 + $0x308] sm:$0xff] %v2712_v28 }
 0x2e1   :  { %2775 = vst [vmem:[#allocation5 + $0x100] sm:$0xff] %v2647_v51  ;;  %2839 = vst [vmem:[#allocation5 + $0x300] sm:$0xff] %v2711_v18  ;;  %v3520_v5 = vpop.f32.mrb[42].mxu0  ;;  %v3616_v14 = vpop.f32.mrb[42].mxu1 }
 0x2e2   :  { %v2650_v15 = vmul.f32 %v3881_v30, %v3520_v5  ;;  %v2714_v54 = vmul.f32 %v3882_v27, %v3616_v14  ;;  %v2146_v24 = vpop.f32.mrb[43].mxu0  ;;  %v2466_v50 = vpop.f32.mrb[43].mxu1  ;;  %v3902_v5 = vld [vmem:[%s6020_s3 + $0x368] sm:$0xff]  ;;  %v3903_v27 = vld [vmem:[%s6020_s3 + $0x160] sm:$0xff] }
 0x2e3   :  { %v2649_v58 = vmul.f32 %v3883_v6, %v2146_v24  ;;  %v2713_v47 = vmul.f32 %v3884_v2, %v2466_v50  ;;  %v3904_v24 = vld [vmem:[%s6020_s3 + $0x360] sm:$0xff]  ;;  %v3905_v2 = vld [vmem:[%s6020_s3 + $0x178] sm:$0xff] }
 0x2e4   :  { %2778 = vst [vmem:[#allocation5 + $0x118] sm:$0xff] %v2650_v15  ;;  %2842 = vst [vmem:[#allocation5 + $0x318] sm:$0xff] %v2714_v54 }
 0x2e5   :  { %2777 = vst [vmem:[#allocation5 + $0x110] sm:$0xff] %v2649_v58  ;;  %2841 = vst [vmem:[#allocation5 + $0x310] sm:$0xff] %v2713_v47  ;;  %v3523_v16 = vpop.f32.mrb[44].mxu0  ;;  %v3619_v41 = vpop.f32.mrb[44].mxu1 }
 0x2e6   :  { %v2652_v31 = vmul.f32 %v3885_v36, %v3523_v16  ;;  %v2716_v48 = vmul.f32 %v3886_v22, %v3619_v41  ;;  %v2156_v63 = vpop.f32.mrb[45].mxu0  ;;  %v2476_v20 = vpop.f32.mrb[45].mxu1  ;;  %v3906_v16 = vld [vmem:[%s6020_s3 + $0x378] sm:$0xff]  ;;  %v3907_v22 = vld [vmem:[%s6020_s3 + $0x170] sm:$0xff] }
 0x2e7   :  { %v2651_v59 = vmul.f32 %v3887_v21, %v2156_v63  ;;  %v2715_v40 = vmul.f32 %v3888_v25, %v2476_v20  ;;  %v3908_v63 = vld [vmem:[%s6020_s3 + $0x370] sm:$0xff]  ;;  %v3909_v25 = vld [vmem:[%s6020_s3 + $0x188] sm:$0xff] }
 0x2e8   :  { %2780 = vst [vmem:[#allocation5 + $0x128] sm:$0xff] %v2652_v31  ;;  %2844 = vst [vmem:[#allocation5 + $0x328] sm:$0xff] %v2716_v48 }
 0x2e9   :  { %2779 = vst [vmem:[#allocation5 + $0x120] sm:$0xff] %v2651_v59  ;;  %2843 = vst [vmem:[#allocation5 + $0x320] sm:$0xff] %v2715_v40  ;;  %v3526_v35 = vpop.f32.mrb[46].mxu0  ;;  %v3622_v17 = vpop.f32.mrb[46].mxu1 }
 0x2ea   :  { %v2654_v52 = vmul.f32 %v3889_v7, %v3526_v35  ;;  %v2718_v12 = vmul.f32 %v3890_v33, %v3622_v17  ;;  %v2166_v32 = vpop.f32.mrb[47].mxu0  ;;  %v2486_v44 = vpop.f32.mrb[47].mxu1  ;;  %v3910_v35 = vld [vmem:[%s6020_s3 + $0x388] sm:$0xff]  ;;  %v3911_v33 = vld [vmem:[%s6020_s3 + $0x180] sm:$0xff] }
 0x2eb   :  { %v2653_v60 = vmul.f32 %v3891_v13, %v2166_v32  ;;  %v2717_v42 = vmul.f32 %v3892_v56, %v2486_v44  ;;  %v3912_v32 = vld [vmem:[%s6020_s3 + $0x380] sm:$0xff]  ;;  %v3913_v56 = vld [vmem:[%s6020_s3 + $0x198] sm:$0xff] }
 0x2ec   :  { %2782 = vst [vmem:[#allocation5 + $0x138] sm:$0xff] %v2654_v52  ;;  %2846 = vst [vmem:[#allocation5 + $0x338] sm:$0xff] %v2718_v12 }
 0x2ed   :  { %2781 = vst [vmem:[#allocation5 + $0x130] sm:$0xff] %v2653_v60  ;;  %2845 = vst [vmem:[#allocation5 + $0x330] sm:$0xff] %v2717_v42  ;;  %v3529_v0 = vpop.f32.mrb[48].mxu0  ;;  %v3625_v10 = vpop.f32.mrb[48].mxu1 }
 0x2ee   :  { %v2656_v4 = vmul.f32 %v3893_v45, %v3529_v0  ;;  %v2720_v61 = vmul.f32 %v3894_v46, %v3625_v10  ;;  %v2176_v34 = vpop.f32.mrb[49].mxu0  ;;  %v2496_v23 = vpop.f32.mrb[49].mxu1  ;;  %v3914_v0 = vld [vmem:[%s6020_s3 + $0x398] sm:$0xff]  ;;  %v3915_v46 = vld [vmem:[%s6020_s3 + $0x190] sm:$0xff] }
 0x2ef   :  { %v2655_v9 = vmul.f32 %v3895_v38, %v2176_v34  ;;  %v2719_v11 = vmul.f32 %v3896_v37, %v2496_v23  ;;  %v3916_v34 = vld [vmem:[%s6020_s3 + $0x390] sm:$0xff]  ;;  %v3917_v37 = vld [vmem:[%s6020_s3 + $0x1a8] sm:$0xff] }
 0x2f0   :  { %2784 = vst [vmem:[#allocation5 + $0x148] sm:$0xff] %v2656_v4  ;;  %2848 = vst [vmem:[#allocation5 + $0x348] sm:$0xff] %v2720_v61 }
 0x2f1   :  { %2783 = vst [vmem:[#allocation5 + $0x140] sm:$0xff] %v2655_v9  ;;  %2847 = vst [vmem:[#allocation5 + $0x340] sm:$0xff] %v2719_v11  ;;  %v3532_v29 = vpop.f32.mrb[50].mxu0  ;;  %v3628_v1 = vpop.f32.mrb[50].mxu1 }
 0x2f2   :  { %v2658_v43 = vmul.f32 %v3897_v26, %v3532_v29  ;;  %v2722_v19 = vmul.f32 %v3898_v53, %v3628_v1  ;;  %v2186_v57 = vpop.f32.mrb[51].mxu0  ;;  %v2506_v62 = vpop.f32.mrb[51].mxu1  ;;  %v3918_v29 = vld [vmem:[%s6020_s3 + $0x3a8] sm:$0xff]  ;;  %v3919_v53 = vld [vmem:[%s6020_s3 + $0x1a0] sm:$0xff] }
 0x2f3   :  { %v2657_v28 = vmul.f32 %v3899_v3, %v2186_v57  ;;  %v2721_v39 = vmul.f32 %v3900_v55, %v2506_v62  ;;  %v3920_v57 = vld [vmem:[%s6020_s3 + $0x3a0] sm:$0xff]  ;;  %v3921_v55 = vld [vmem:[%s6020_s3 + $0x1b8] sm:$0xff] }
 0x2f4   :  { %2786 = vst [vmem:[#allocation5 + $0x158] sm:$0xff] %v2658_v43  ;;  %2850 = vst [vmem:[#allocation5 + $0x358] sm:$0xff] %v2722_v19 }
 0x2f5   :  { %2785 = vst [vmem:[#allocation5 + $0x150] sm:$0xff] %v2657_v28  ;;  %2849 = vst [vmem:[#allocation5 + $0x350] sm:$0xff] %v2721_v39  ;;  %v3535_v49 = vpop.f32.mrb[52].mxu0  ;;  %v3631_v51 = vpop.f32.mrb[52].mxu1 }
 0x2f6   :  { %v2660_v18 = vmul.f32 %v3901_v8, %v3535_v49  ;;  %v2724_v14 = vmul.f32 %v3902_v5, %v3631_v51  ;;  %v2196_v30 = vpop.f32.mrb[53].mxu0  ;;  %v2516_v15 = vpop.f32.mrb[53].mxu1  ;;  %v3922_v49 = vld [vmem:[%s6020_s3 + $0x3b8] sm:$0xff]  ;;  %v3923_v5 = vld [vmem:[%s6020_s3 + $0x1b0] sm:$0xff] }
 0x2f7   :  { %v2659_v54 = vmul.f32 %v3903_v27, %v2196_v30  ;;  %v2723_v50 = vmul.f32 %v3904_v24, %v2516_v15  ;;  %v3924_v30 = vld [vmem:[%s6020_s3 + $0x3b0] sm:$0xff]  ;;  %v3925_v24 = vld [vmem:[%s6020_s3 + $0x1c8] sm:$0xff] }
 0x2f8   :  { %2788 = vst [vmem:[#allocation5 + $0x168] sm:$0xff] %v2660_v18  ;;  %2852 = vst [vmem:[#allocation5 + $0x368] sm:$0xff] %v2724_v14 }
 0x2f9   :  { %2787 = vst [vmem:[#allocation5 + $0x160] sm:$0xff] %v2659_v54  ;;  %2851 = vst [vmem:[#allocation5 + $0x360] sm:$0xff] %v2723_v50  ;;  %v3538_v6 = vpop.f32.mrb[54].mxu0  ;;  %v3634_v58 = vpop.f32.mrb[54].mxu1 }
 0x2fa   :  { %v2662_v47 = vmul.f32 %v3905_v2, %v3538_v6  ;;  %v2726_v41 = vmul.f32 %v3906_v16, %v3634_v58  ;;  %v2206_v36 = vpop.f32.mrb[55].mxu0  ;;  %v2526_v31 = vpop.f32.mrb[55].mxu1  ;;  %v3926_v6 = vld [vmem:[%s6020_s3 + $0x3c8] sm:$0xff]  ;;  %v3927_v16 = vld [vmem:[%s6020_s3 + $0x1c0] sm:$0xff] }
 0x2fb   :  { %v2661_v48 = vmul.f32 %v3907_v22, %v2206_v36  ;;  %v2725_v20 = vmul.f32 %v3908_v63, %v2526_v31  ;;  %v3928_v36 = vld [vmem:[%s6020_s3 + $0x3c0] sm:$0xff]  ;;  %v3929_v63 = vld [vmem:[%s6020_s3 + $0x1d8] sm:$0xff] }
 0x2fc   :  { %2790 = vst [vmem:[#allocation5 + $0x178] sm:$0xff] %v2662_v47  ;;  %2854 = vst [vmem:[#allocation5 + $0x378] sm:$0xff] %v2726_v41 }
 0x2fd   :  { %2789 = vst [vmem:[#allocation5 + $0x170] sm:$0xff] %v2661_v48  ;;  %2853 = vst [vmem:[#allocation5 + $0x370] sm:$0xff] %v2725_v20  ;;  %v3541_v21 = vpop.f32.mrb[56].mxu0  ;;  %v3637_v59 = vpop.f32.mrb[56].mxu1 }
 0x2fe   :  { %v2664_v40 = vmul.f32 %v3909_v25, %v3541_v21  ;;  %v2728_v17 = vmul.f32 %v3910_v35, %v3637_v59  ;;  %v2216_v7 = vpop.f32.mrb[57].mxu0  ;;  %v2536_v52 = vpop.f32.mrb[57].mxu1  ;;  %v3930_v21 = vld [vmem:[%s6020_s3 + $0x3d8] sm:$0xff]  ;;  %v3931_v35 = vld [vmem:[%s6020_s3 + $0x1d0] sm:$0xff] }
 0x2ff   :  { %v2663_v12 = vmul.f32 %v3911_v33, %v2216_v7  ;;  %v2727_v44 = vmul.f32 %v3912_v32, %v2536_v52  ;;  %v3932_v7 = vld [vmem:[%s6020_s3 + $0x3d0] sm:$0xff] }
 0x300   :  { %2792 = vst [vmem:[#allocation5 + $0x188] sm:$0xff] %v2664_v40  ;;  %2856 = vst [vmem:[#allocation5 + $0x388] sm:$0xff] %v2728_v17 }
 0x301   :  { %2791 = vst [vmem:[#allocation5 + $0x180] sm:$0xff] %v2663_v12  ;;  %2855 = vst [vmem:[#allocation5 + $0x380] sm:$0xff] %v2727_v44  ;;  %v3544_v13 = vpop.f32.mrb[58].mxu0  ;;  %v3640_v60 = vpop.f32.mrb[58].mxu1  ;;  %v3933_v12 = vld [vmem:[%s6020_s3 + $0x1e8] sm:$0xff] }
 0x302   :  { %v2666_v42 = vmul.f32 %v3913_v56, %v3544_v13  ;;  %v2730_v10 = vmul.f32 %v3914_v0, %v3640_v60  ;;  %v2226_v45 = vpop.f32.mrb[59].mxu0  ;;  %v2546_v4 = vpop.f32.mrb[59].mxu1  ;;  %v3934_v13 = vld [vmem:[%s6020_s3 + $0x1e0] sm:$0xff] }
 0x303   :  { %v2665_v61 = vmul.f32 %v3915_v46, %v2226_v45  ;;  %v2729_v23 = vmul.f32 %v3916_v34, %v2546_v4  ;;  %v3936_v45 = vld [vmem:[%s6020_s3 + $0x3e0] sm:$0xff] }
 0x304   :  { %2794 = vst [vmem:[#allocation5 + $0x198] sm:$0xff] %v2666_v42  ;;  %2858 = vst [vmem:[#allocation5 + $0x398] sm:$0xff] %v2730_v10  ;;  %v3935_v42 = vld [vmem:[%s6020_s3 + $0x3e8] sm:$0xff] }
 0x305   :  { %2793 = vst [vmem:[#allocation5 + $0x190] sm:$0xff] %v2665_v61  ;;  %2857 = vst [vmem:[#allocation5 + $0x390] sm:$0xff] %v2729_v23  ;;  %v3547_v38 = vpop.f32.mrb[60].mxu0  ;;  %v3643_v9 = vpop.f32.mrb[60].mxu1  ;;  %v3937_v61 = vld [vmem:[%s6020_s3 + $0x1f8] sm:$0xff] }
 0x306   :  { %v2668_v11 = vmul.f32 %v3917_v37, %v3547_v38  ;;  %v2732_v1 = vmul.f32 %v3918_v29, %v3643_v9  ;;  %v2236_v26 = vpop.f32.mrb[61].mxu0  ;;  %v2556_v43 = vpop.f32.mrb[61].mxu1  ;;  %v3938_v38 = vld [vmem:[%s6020_s3 + $0x1f0] sm:$0xff] }
 0x307   :  { %v2667_v19 = vmul.f32 %v3919_v53, %v2236_v26  ;;  %v2731_v62 = vmul.f32 %v3920_v57, %v2556_v43  ;;  %v3940_v26 = vld [vmem:[%s6020_s3 + $0x3f0] sm:$0xff] }
 0x308   :  { %2796 = vst [vmem:[#allocation5 + $0x1a8] sm:$0xff] %v2668_v11  ;;  %2860 = vst [vmem:[#allocation5 + $0x3a8] sm:$0xff] %v2732_v1  ;;  %v3939_v11 = vld [vmem:[%s6020_s3 + $0x3f8] sm:$0xff] }
 0x309   :  { %2795 = vst [vmem:[#allocation5 + $0x1a0] sm:$0xff] %v2667_v19  ;;  %2859 = vst [vmem:[#allocation5 + $0x3a0] sm:$0xff] %v2731_v62  ;;  %v3550_v3 = vpop.f32.mrb[62].mxu0  ;;  %v3646_v28 = vpop.f32.mrb[62].mxu1 }
 0x30a   :  { %v2670_v39 = vmul.f32 %v3921_v55, %v3550_v3  ;;  %v2734_v51 = vmul.f32 %v3922_v49, %v3646_v28  ;;  %v2246_v8 = vpop.f32.mrb[63].mxu0  ;;  %v2566_v18 = vpop.f32.mrb[63].mxu1 }
 0x30b   :  { %v2669_v14 = vmul.f32 %v3923_v5, %v2246_v8  ;;  %v2733_v15 = vmul.f32 %v3924_v30, %v2566_v18 }
 0x30c   :  { %2798 = vst [vmem:[#allocation5 + $0x1b8] sm:$0xff] %v2670_v39  ;;  %2862 = vst [vmem:[#allocation5 + $0x3b8] sm:$0xff] %v2734_v51 }
 0x30d   :  { %2797 = vst [vmem:[#allocation5 + $0x1b0] sm:$0xff] %v2669_v14  ;;  %2861 = vst [vmem:[#allocation5 + $0x3b0] sm:$0xff] %v2733_v15  ;;  %v3553_v27 = vpop.f32.mrb[64].mxu0  ;;  %v3649_v54 = vpop.f32.mrb[64].mxu1 }
 0x30e   :  { %v2672_v50 = vmul.f32 %v3925_v24, %v3553_v27  ;;  %v2736_v58 = vmul.f32 %v3926_v6, %v3649_v54  ;;  %v2256_v2 = vpop.f32.mrb[65].mxu0  ;;  %v2576_v47 = vpop.f32.mrb[65].mxu1 }
 0x30f   :  { %v2671_v41 = vmul.f32 %v3927_v16, %v2256_v2  ;;  %v2735_v31 = vmul.f32 %v3928_v36, %v2576_v47 }
 0x310   :  { %2800 = vst [vmem:[#allocation5 + $0x1c8] sm:$0xff] %v2672_v50  ;;  %2864 = vst [vmem:[#allocation5 + $0x3c8] sm:$0xff] %v2736_v58 }
 0x311   :  { %2799 = vst [vmem:[#allocation5 + $0x1c0] sm:$0xff] %v2671_v41  ;;  %2863 = vst [vmem:[#allocation5 + $0x3c0] sm:$0xff] %v2735_v31  ;;  %v3556_v22 = vpop.f32.mrb[66].mxu0 }
 0x312   :  { %v3652_v48 = vpop.f32.mrb[66].mxu1  ;;  %v2674_v20 = vmul.f32 %v3929_v63, %v3556_v22  ;;  %v2266_v25 = vpop.f32.mrb[67].mxu0 }
 0x313   :  { %v2738_v59 = vmul.f32 %v3930_v21, %v3652_v48  ;;  %v2586_v40 = vpop.f32.mrb[67].mxu1  ;;  %v2673_v17 = vmul.f32 %v3931_v35, %v2266_v25 }
 0x314   :  { %v2737_v52 = vmul.f32 %v3932_v7, %v2586_v40  ;;  %2802 = vst [vmem:[#allocation5 + $0x1d8] sm:$0xff] %v2674_v20 }
 0x315   :  { %2866 = vst [vmem:[#allocation5 + $0x3d8] sm:$0xff] %v2738_v59  ;;  %2801 = vst [vmem:[#allocation5 + $0x1d0] sm:$0xff] %v2673_v17  ;;  %v3559_v33 = vpop.f32.mrb[68].mxu0 }
 0x316   :  { %2865 = vst [vmem:[#allocation5 + $0x3d0] sm:$0xff] %v2737_v52  ;;  %v2676_v32 = vmul.f32 %v3933_v12, %v3559_v33  ;;  %v2276_v44 = vpop.f32.mrb[69].mxu0 }
 0x317   :  { %v2675_v60 = vmul.f32 %v3934_v13, %v2276_v44 }
 0x318   :  { %2804 = vst [vmem:[#allocation5 + $0x1e8] sm:$0xff] %v2676_v32 }
 0x319   :  { %2803 = vst [vmem:[#allocation5 + $0x1e0] sm:$0xff] %v2675_v60 }
 0x31a   :  { %v3655_v56 = vpop.f32.mrb[68].mxu1 }
 0x31b   :  { %v2740_v0 = vmul.f32 %v3935_v42, %v3655_v56  ;;  %v2596_v10 = vpop.f32.mrb[69].mxu1 }
 0x31c   :  { %v2739_v4 = vmul.f32 %v3936_v45, %v2596_v10 }
 0x31d   :  { %2868 = vst [vmem:[#allocation5 + $0x3e8] sm:$0xff] %v2740_v0  ;;  %v3562_v46 = vpop.f32.mrb[70].mxu0 }
 0x31e   :  { %2867 = vst [vmem:[#allocation5 + $0x3e0] sm:$0xff] %v2739_v4  ;;  %v2678_v34 = vmul.f32 %v3937_v61, %v3562_v46  ;;  %v2286_v23 = vpop.f32.mrb[71].mxu0 }
 0x31f   :  { %v2677_v9 = vmul.f32 %v3938_v38, %v2286_v23 }
 0x320   :  { %2806 = vst [vmem:[#allocation5 + $0x1f8] sm:$0xff] %v2678_v34 }
 0x321   :  { %2805 = vst [vmem:[#allocation5 + $0x1f0] sm:$0xff] %v2677_v9 }
 0x322   :  { %v3658_v37 = vpop.f32.mrb[70].mxu1 }
 0x323   :  { %v2742_v29 = vmul.f32 %v3939_v11, %v3658_v37  ;;  %v2606_v1 = vpop.f32.mrb[71].mxu1 }
 0x324   :  { %v2741_v43 = vmul.f32 %v3940_v26, %v2606_v1 }
 0x325   :  { %2870 = vst [vmem:[#allocation5 + $0x3f8] sm:$0xff] %v2742_v29 }
 0x326   :  { %2869 = vst [vmem:[#allocation5 + $0x3f0] sm:$0xff] %v2741_v43 }
 0x327   :  { %3964 = shalt.err (!%p3961_p9)
}
 0x328   :  { %s3965_s2 = scalar_lea.hbm %s6021_s4, 16384 }
 0x329   :  { %p3966_p10 = scmp.ne.s32.totalorder %s6021_s4, %s3965_s2  ;;  %p3969_p11 = scmp.lt.u32.totalorder %s3965_s2, %s6021_s4 }
 0x32b   :  { %p3971_p12 = pnand %p3969_p11, %p3966_p10 }
 0x32d   :  { %3974 = shalt.err (!%p3971_p12)
}
 0x32e   :  { %s3987_s15 = smov 128   ;;  %s3988_s16 = smov 8  }
 0x32f   :  { %2882 = dma.vmem_to_hbm [thread:$0]  %s2877_s30, 16384, %s6021_s4, [#allocation3], %s3987_s15, %s3987_s15, %s3988_s16  }
 0x330   :  { %3977 = dma.done.wait [#allocation3], 16384  }
 0x331   :  { %3978 = vsyncadd [#allocation3], 4294950912 }
 0x332   :  { %2886 = vsyncpa [#allocation3], 1 }
 0x333   :  { %2887 = vsyncpa [#allocation4], 1 }

</bundles_post_ra>
